<compile_context>
chip_gen: v7x
topology: tpu7x:2x2x1
jax: 0.10.0
libtpu: 0.0.40
codegen_flags: <defaults>
</compile_context>

<pallas_src>
import jax
import jax.numpy as jnp
from jax.experimental import pallas as pl
from jax.experimental.pallas import tpu as pltpu

LANE = 128
SUBLANE_BF16 = 16   # bf16 packs two rows per sublane -> keep tb % 16 == 0


def _round_up(x, m):
    return (x + m - 1) // m * m


def _choose_tk(gene_num):
    # 512-wide K tiles hit ~85% of the HBM roofline; genes are padded up to a
    # multiple of tk instead of requiring divisibility.
    return min(512, _round_up(gene_num, LANE))


def _vmem_capacity_bytes():
    """Physical per-core VMEM; conservative 64 MiB (v7x) if the query fails."""
    try:
        info = pltpu.get_tpu_info()
        cap = getattr(info, "vmem_capacity_bytes", None)
        if cap:
            return int(cap)
    except Exception:
        pass
    return 64 * 1024 * 1024


# ----------------------------------------------------------------------------
# Kernel: one (batch-tile, K-tile) grid step.
# ----------------------------------------------------------------------------
def deng_kernel(x_ref, cm_ref, w1_ref, b1_ref, w2_ref, b2_ref, w3_ref, b3_ref,
                o_ref, h0_acc):
    k = pl.program_id(1)

    @pl.when(k == 0)
    def _():
        h0_acc[...] = jnp.zeros_like(h0_acc)

    # Partial x @ cm^T for this gene chunk (bf16 x bf16 -> f32 accumulate).
    h0_acc[...] += jnp.dot(x_ref[...], cm_ref[...],
                           preferred_element_type=jnp.float32)

    # MLP epilogue only once the reduction over genes is complete.
    @pl.when(k == pl.num_programs(1) - 1)
    def _():
        h1 = jnp.dot(h0_acc[...], w1_ref[...],
                     preferred_element_type=jnp.float32)
        h1 = jnp.maximum(h1 + b1_ref[...], 0.0)

        h2 = jnp.dot(h1, w2_ref[...], preferred_element_type=jnp.float32)
        h2 = jnp.maximum(h2 + b2_ref[...], 0.0)

        out = jnp.dot(h2, w3_ref[...], preferred_element_type=jnp.float32)
        o_ref[...] = (out + b3_ref[...]).astype(o_ref.dtype)


# ----------------------------------------------------------------------------
# One-time parameter preparation: transpose to [in, out], pad, choose dtypes.
# ----------------------------------------------------------------------------
def prepare_params(cm, w1, b1, w2, b2, w3, b3):
    """cm:[P,G], w*: PyTorch [out,in], b*: [out] -> kernel-ready padded arrays."""
    P, G = cm.shape
    H1 = w1.shape[0]                      # 256
    H2 = w2.shape[0]                      # 128
    C = w3.shape[0]                       # 2
    tk = _choose_tk(G)
    Gp = _round_up(G, tk)
    Pp = _round_up(P, LANE)
    Cp = _round_up(C, LANE)

    # Connection matrix transposed to [gene, pathway], zero padded, bf16
    # (0/1 entries are exactly representable in bf16).
    cm_t = jnp.zeros((Gp, Pp), jnp.bfloat16).at[:G, :P].set(
        cm.astype(jnp.bfloat16).T)
    # Padded pathway rows of W1 are zero -> padded h0 lanes contribute nothing.
    w1_t = jnp.zeros((Pp, H1), jnp.float32).at[:P, :].set(w1.T)
    b1_r = b1.reshape(1, H1).astype(jnp.float32)
    w2_t = w2.T.astype(jnp.float32)       # [256, 128] already lane-aligned
    b2_r = b2.reshape(1, H2).astype(jnp.float32)
    w3_t = jnp.zeros((H2, Cp), jnp.float32).at[:, :C].set(w3.T)
    b3_r = jnp.zeros((1, Cp), jnp.float32).at[:, :C].set(b3.reshape(1, C))
    return cm_t, w1_t, b1_r, w2_t, b2_r, w3_t, b3_r


# ----------------------------------------------------------------------------
# Forward wrapper.
# ----------------------------------------------------------------------------
def deng_forward(x, params, n_classes=2):
    cm_t, w1_t, b1, w2_t, b2, w3_t, b3 = params
    B, G = x.shape
    Gp, Pp = cm_t.shape
    H1 = w1_t.shape[1]
    H2 = w2_t.shape[1]
    Cp = w3_t.shape[1]

    tk = _choose_tk(G)
    assert Gp == _round_up(G, tk), "params were prepared for a different gene_num"

    # Generation-aware budgets: v5e/v6e have 128 MiB VMEM, v7x 64 MiB.
    cap = _vmem_capacity_bytes()
    big_vmem = cap >= (96 << 20)
    tb_cap = 512 if big_vmem else 256
    vmem_limit = min(int(cap * 0.82), 100 * 1024 * 1024)

    # Batch tile: multiple of 16 (bf16 sublane packing), capped per chip gen.
    tb = min(tb_cap, _round_up(B, SUBLANE_BF16))
    Bp = _round_up(B, tb)
    # Megacore (v7x): make sure the "parallel" batch axis has >= 2 programs.
    if Bp // tb < 2 and B > SUBLANE_BF16:
        tb = _round_up((B + 1) // 2, SUBLANE_BF16)
        Bp = 2 * tb

    # Cast to bf16 and zero-pad only the ragged batch/gene tail (explicit
    # zeros -- never rely on 0 * garbage for out-of-range gene columns).
    xb = x.astype(jnp.bfloat16)
    if (Bp, Gp) != (B, G):
        xb = jnp.pad(xb, ((0, Bp - B), (0, Gp - G)))

    grid = (Bp // tb, Gp // tk)

    def run(single_buffer_weights):
        const = lambda i, k: (0, 0)
        if single_buffer_weights:
            # Resident blocks (constant index_map): one buffer is enough.
            wspec = lambda shape: pl.BlockSpec(shape, const,
                                               pipeline_mode=pl.Buffered(1))
        else:
            wspec = lambda shape: pl.BlockSpec(shape, const)

        return pl.pallas_call(
            deng_kernel,
            out_shape=jax.ShapeDtypeStruct((Bp, Cp), jnp.float32),
            grid_spec=pltpu.PrefetchScalarGridSpec(
                num_scalar_prefetch=0,
                grid=grid,
                in_specs=[
                    pl.BlockSpec((tb, tk), lambda i, k: (i, k)),   # x tile (bf16, streamed)
                    pl.BlockSpec((tk, Pp), lambda i, k: (k, 0)),   # cm_t slice (bf16, streamed)
                    wspec((Pp, H1)),                               # W1^T (resident)
                    wspec((1, H1)),                                # b1
                    wspec((H1, H2)),                               # W2^T
                    wspec((1, H2)),                                # b2
                    wspec((H2, Cp)),                               # W3^T (padded)
                    wspec((1, Cp)),                                # b3 (padded)
                ],
                out_specs=pl.BlockSpec((tb, Cp), lambda i, k: (i, 0)),
                scratch_shapes=[pltpu.VMEM((tb, Pp), jnp.float32)],  # h0 accumulator
            ),
            compiler_params=pltpu.CompilerParams(
                dimension_semantics=("parallel", "arbitrary"),
                vmem_limit_bytes=vmem_limit,
            ),
        )(xb, cm_t, w1_t, b1, w2_t, b2, w3_t, b3)

    try:
        out = run(single_buffer_weights=True)
    except Exception:
        # Older runtimes may reject pl.Buffered(1); default double buffering
        # is functionally identical, just uses a bit more VMEM.
        out = run(single_buffer_weights=False)

    return out[:B, :n_classes]


# ----------------------------------------------------------------------------
# Deterministic init mimicking PyTorch defaults (weights in [out, in] layout).
# ----------------------------------------------------------------------------
def init_params(key, gene_num, pathway_num):
    ks = jax.random.split(key, 8)

    def linear(kw, kb, fan_in, fan_out):
        bound = 1.0 / jnp.sqrt(fan_in)
        w = jax.random.uniform(kw, (fan_out, fan_in), jnp.float32, -bound, bound)
        b = jax.random.uniform(kb, (fan_out,), jnp.float32, -bound, bound)
        return w, b

    # Binary connection matrix (frozen / non-trainable in the original model).
    cm = (jax.random.uniform(ks[0], (pathway_num, gene_num)) > 0.5).astype(
        jnp.float32)
    w1, b1 = linear(ks[1], ks[2], pathway_num, 256)
    w2, b2 = linear(ks[3], ks[4], 256, 128)
    w3, b3 = linear(ks[5], ks[6], 128, 2)
    return cm, w1, b1, w2, b2, w3, b3


if __name__ == "__main__":
    B, gene_num, pathway_num = 8, 64, 32

    key = jax.random.PRNGKey(0)
    k_x, k_p = jax.random.split(key)
    x = jax.random.normal(k_x, (B, gene_num), jnp.float32)
    cm, w1, b1, w2, b2, w3, b3 = init_params(k_p, gene_num, pathway_num)

    # One-time weight transform (transpose + pad + bf16 cm), then the kernel.
    params = prepare_params(cm, w1, b1, w2, b2, w3, b3)
    out = deng_forward(x, params, n_classes=2)
    out = jax.block_until_ready(out)

    # Pure-JAX f32 reference.  The kernel keeps x / cm in bf16 for the first
    # matmul (f32 accumulation), so allow bf16-level drift (~1e-3 abs here).
    h0 = x @ cm.T
    h1 = jnp.maximum(h0 @ w1.T + b1, 0.0)
    h2 = jnp.maximum(h1 @ w2.T + b2, 0.0)
    ref = h2 @ w3.T + b3
    assert out.shape == (B, 2)
    assert jnp.allclose(out, ref, atol=2e-2, rtol=2e-2), (
        float(jnp.max(jnp.abs(out - ref))))

    print("KERNEL_OK")
</pallas_src>

<mosaic_0001>
module attributes {stable_mosaic.version = 11 : i64} {
  func.func @deng_kernel(%arg0: i32, %arg1: i32, %arg2: memref<16x128xbf16, #tpu.memory_space<vmem>>, %arg3: memref<128x128xbf16, #tpu.memory_space<vmem>>, %arg4: memref<128x256xf32, #tpu.memory_space<vmem>>, %arg5: memref<1x256xf32, #tpu.memory_space<vmem>>, %arg6: memref<256x128xf32, #tpu.memory_space<vmem>>, %arg7: memref<1x128xf32, #tpu.memory_space<vmem>>, %arg8: memref<128x128xf32, #tpu.memory_space<vmem>>, %arg9: memref<1x128xf32, #tpu.memory_space<vmem>>, %arg10: memref<16x128xf32, #tpu.memory_space<vmem>>, %arg11: memref<16x128xf32, #tpu.memory_space<vmem>>) attributes {dimension_semantics = [#tpu.dimension_semantics<parallel>, #tpu.dimension_semantics<arbitrary>], iteration_bounds = array<i64: 1, 1>, scalar_prefetch = 0 : i64, scratch_operands = 1 : i64, tpu.core_type = #tpu.core_type<tc>, window_params = [{transform_indices = @transform_0, window_bounds = array<i64: 16, 128>}, {transform_indices = @transform_1, window_bounds = array<i64: 128, 128>}, {pipeline_mode = #tpu.pipeline_mode<synchronous>, transform_indices = @transform_2, window_bounds = array<i64: 128, 256>}, {pipeline_mode = #tpu.pipeline_mode<synchronous>, transform_indices = @transform_3, window_bounds = array<i64: 1, 256>}, {pipeline_mode = #tpu.pipeline_mode<synchronous>, transform_indices = @transform_4, window_bounds = array<i64: 256, 128>}, {pipeline_mode = #tpu.pipeline_mode<synchronous>, transform_indices = @transform_5, window_bounds = array<i64: 1, 128>}, {pipeline_mode = #tpu.pipeline_mode<synchronous>, transform_indices = @transform_6, window_bounds = array<i64: 128, 128>}, {pipeline_mode = #tpu.pipeline_mode<synchronous>, transform_indices = @transform_7, window_bounds = array<i64: 1, 128>}, {transform_indices = @transform_8, window_bounds = array<i64: 16, 128>}]} {
    %c0_i32 = arith.constant 0 : i32
    %0 = arith.cmpi eq, %arg1, %c0_i32 : i32
    %1 = arith.extui %0 : i1 to i32
    %c0_i32_0 = arith.constant 0 : i32
    %2 = arith.cmpi ne, %1, %c0_i32_0 : i32
    scf.if %2 {
      %cst_10 = arith.constant 0.000000e+00 : f32
      %12 = vector.broadcast %cst_10 : f32 to vector<16x128xf32>
      %c0_11 = arith.constant 0 : index
      %c0_12 = arith.constant 0 : index
      %13 = vector.load %arg11[%c0_11, %c0_12] : memref<16x128xf32, #tpu.memory_space<vmem>>, vector<16x128xf32>
      tpu.vector_store %arg11[%c0_11, %c0_12], %12 {strides = array<i32>} : memref<16x128xf32, #tpu.memory_space<vmem>>, vector<16x128xf32>,
    } else {
    }
    %c0 = arith.constant 0 : index
    %c0_1 = arith.constant 0 : index
    %3 = vector.load %arg11[%c0, %c0_1] : memref<16x128xf32, #tpu.memory_space<vmem>>, vector<16x128xf32>
    %c0_2 = arith.constant 0 : index
    %c0_3 = arith.constant 0 : index
    %4 = vector.load %arg2[%c0_2, %c0_3] : memref<16x128xbf16, #tpu.memory_space<vmem>>, vector<16x128xbf16>
    %c0_4 = arith.constant 0 : index
    %c0_5 = arith.constant 0 : index
    %5 = vector.load %arg3[%c0_4, %c0_5] : memref<128x128xbf16, #tpu.memory_space<vmem>>, vector<128x128xbf16>
    %cst = arith.constant dense<0.000000e+00> : vector<16x128xf32>
    %6 = tpu.matmul %4, %5, %cst {dimension_numbers = #tpu.dot_dimension_numbers<[1], [0], [0], [1], [0, 0, 1, 1], [], []>} : vector<16x128xbf16>, vector<128x128xbf16>, vector<16x128xf32> -> vector<16x128xf32>
    %7 = arith.addf %3, %6 : vector<16x128xf32>
    %c0_6 = arith.constant 0 : index
    %c0_7 = arith.constant 0 : index
    %8 = vector.load %arg11[%c0_6, %c0_7] : memref<16x128xf32, #tpu.memory_space<vmem>>, vector<16x128xf32>
    tpu.vector_store %arg11[%c0_6, %c0_7], %7 {strides = array<i32>} : memref<16x128xf32, #tpu.memory_space<vmem>>, vector<16x128xf32>,
    %c0_i32_8 = arith.constant 0 : i32
    %9 = arith.cmpi eq, %arg1, %c0_i32_8 : i32
    %10 = arith.extui %9 : i1 to i32
    %c0_i32_9 = arith.constant 0 : i32
    %11 = arith.cmpi ne, %10, %c0_i32_9 : i32
    scf.if %11 {
      %c0_10 = arith.constant 0 : index
      %c0_11 = arith.constant 0 : index
      %12 = vector.load %arg11[%c0_10, %c0_11] : memref<16x128xf32, #tpu.memory_space<vmem>>, vector<16x128xf32>
      %c0_12 = arith.constant 0 : index
      %c0_13 = arith.constant 0 : index
      %13 = vector.load %arg4[%c0_12, %c0_13] : memref<128x256xf32, #tpu.memory_space<vmem>>, vector<128x256xf32>
      %cst_14 = arith.constant dense<0.000000e+00> : vector<16x256xf32>
      %14 = tpu.matmul %12, %13, %cst_14 {dimension_numbers = #tpu.dot_dimension_numbers<[1], [0], [0], [1], [0, 0, 1, 1], [], []>} : vector<16x128xf32>, vector<128x256xf32>, vector<16x256xf32> -> vector<16x256xf32>
      %c0_15 = arith.constant 0 : index
      %c0_16 = arith.constant 0 : index
      %15 = vector.load %arg5[%c0_15, %c0_16] : memref<1x256xf32, #tpu.memory_space<vmem>>, vector<1x256xf32>
      %16 = vector.broadcast %15 : vector<1x256xf32> to vector<16x256xf32>
      %17 = arith.addf %14, %16 : vector<16x256xf32>
      %cst_17 = arith.constant 0.000000e+00 : f32
      %18 = vector.broadcast %cst_17 : f32 to vector<16x256xf32>
      %19 = arith.maximumf %17, %18 : vector<16x256xf32>
      %c0_18 = arith.constant 0 : index
      %c0_19 = arith.constant 0 : index
      %20 = vector.load %arg6[%c0_18, %c0_19] : memref<256x128xf32, #tpu.memory_space<vmem>>, vector<256x128xf32>
      %cst_20 = arith.constant dense<0.000000e+00> : vector<16x128xf32>
      %21 = tpu.matmul %19, %20, %cst_20 {dimension_numbers = #tpu.dot_dimension_numbers<[1], [0], [0], [1], [0, 0, 1, 1], [], []>} : vector<16x256xf32>, vector<256x128xf32>, vector<16x128xf32> -> vector<16x128xf32>
      %c0_21 = arith.constant 0 : index
      %c0_22 = arith.constant 0 : index
      %22 = vector.load %arg7[%c0_21, %c0_22] : memref<1x128xf32, #tpu.memory_space<vmem>>, vector<1x128xf32>
      %23 = vector.broadcast %22 : vector<1x128xf32> to vector<16x128xf32>
      %24 = arith.addf %21, %23 : vector<16x128xf32>
      %cst_23 = arith.constant 0.000000e+00 : f32
      %25 = vector.broadcast %cst_23 : f32 to vector<16x128xf32>
      %26 = arith.maximumf %24, %25 : vector<16x128xf32>
      %c0_24 = arith.constant 0 : index
      %c0_25 = arith.constant 0 : index
      %27 = vector.load %arg8[%c0_24, %c0_25] : memref<128x128xf32, #tpu.memory_space<vmem>>, vector<128x128xf32>
      %cst_26 = arith.constant dense<0.000000e+00> : vector<16x128xf32>
      %28 = tpu.matmul %26, %27, %cst_26 {dimension_numbers = #tpu.dot_dimension_numbers<[1], [0], [0], [1], [0, 0, 1, 1], [], []>} : vector<16x128xf32>, vector<128x128xf32>, vector<16x128xf32> -> vector<16x128xf32>
      %c0_27 = arith.constant 0 : index
      %c0_28 = arith.constant 0 : index
      %29 = vector.load %arg9[%c0_27, %c0_28] : memref<1x128xf32, #tpu.memory_space<vmem>>, vector<1x128xf32>
      %30 = vector.broadcast %29 : vector<1x128xf32> to vector<16x128xf32>
      %31 = arith.addf %28, %30 : vector<16x128xf32>
      %c0_29 = arith.constant 0 : index
      %c0_30 = arith.constant 0 : index
      %32 = vector.load %arg10[%c0_29, %c0_30] : memref<16x128xf32, #tpu.memory_space<vmem>>, vector<16x128xf32>
      tpu.vector_store %arg10[%c0_29, %c0_30], %31 {strides = array<i32>} : memref<16x128xf32, #tpu.memory_space<vmem>>, vector<16x128xf32>,
    } else {
    }
    return
  }
  func.func @transform_0(%arg0: i32, %arg1: i32) -> (i32, i32) {
    %c0_i32 = arith.constant 0 : i32
    return %arg0, %arg1 : i32, i32
  }
  func.func @transform_1(%arg0: i32, %arg1: i32) -> (i32, i32) {
    %c0_i32 = arith.constant 0 : i32
    %c0_i32_0 = arith.constant 0 : i32
    return %arg1, %c0_i32 : i32, i32
  }
  func.func @transform_2(%arg0: i32, %arg1: i32) -> (i32, i32) {
    %c0_i32 = arith.constant 0 : i32
    %c0_i32_0 = arith.constant 0 : i32
    %c0_i32_1 = arith.constant 0 : i32
    return %c0_i32, %c0_i32_0 : i32, i32
  }
  func.func @transform_3(%arg0: i32, %arg1: i32) -> (i32, i32) {
    %c0_i32 = arith.constant 0 : i32
    %c0_i32_0 = arith.constant 0 : i32
    %c0_i32_1 = arith.constant 0 : i32
    return %c0_i32, %c0_i32_0 : i32, i32
  }
  func.func @transform_4(%arg0: i32, %arg1: i32) -> (i32, i32) {
    %c0_i32 = arith.constant 0 : i32
    %c0_i32_0 = arith.constant 0 : i32
    %c0_i32_1 = arith.constant 0 : i32
    return %c0_i32, %c0_i32_0 : i32, i32
  }
  func.func @transform_5(%arg0: i32, %arg1: i32) -> (i32, i32) {
    %c0_i32 = arith.constant 0 : i32
    %c0_i32_0 = arith.constant 0 : i32
    %c0_i32_1 = arith.constant 0 : i32
    return %c0_i32, %c0_i32_0 : i32, i32
  }
  func.func @transform_6(%arg0: i32, %arg1: i32) -> (i32, i32) {
    %c0_i32 = arith.constant 0 : i32
    %c0_i32_0 = arith.constant 0 : i32
    %c0_i32_1 = arith.constant 0 : i32
    return %c0_i32, %c0_i32_0 : i32, i32
  }
  func.func @transform_7(%arg0: i32, %arg1: i32) -> (i32, i32) {
    %c0_i32 = arith.constant 0 : i32
    %c0_i32_0 = arith.constant 0 : i32
    %c0_i32_1 = arith.constant 0 : i32
    return %c0_i32, %c0_i32_0 : i32, i32
  }
  func.func @transform_8(%arg0: i32, %arg1: i32) -> (i32, i32) {
    %c0_i32 = arith.constant 0 : i32
    %c0_i32_0 = arith.constant 0 : i32
    return %arg0, %c0_i32 : i32, i32
  }
}

module attributes {stable_mosaic.version = 11 : i64} {
  func.func @deng_kernel(%arg0: i32, %arg1: i32, %arg2: memref<16x128xbf16, #tpu.memory_space<vmem>>, %arg3: memref<128x128xbf16, #tpu.memory_space<vmem>>, %arg4: memref<128x256xf32, #tpu.memory_space<vmem>>, %arg5: memref<1x256xf32, #tpu.memory_space<vmem>>, %arg6: memref<256x128xf32, #tpu.memory_space<vmem>>, %arg7: memref<1x128xf32, #tpu.memory_space<vmem>>, %arg8: memref<128x128xf32, #tpu.memory_space<vmem>>, %arg9: memref<1x128xf32, #tpu.memory_space<vmem>>, %arg10: memref<16x128xf32, #tpu.memory_space<vmem>>, %arg11: memref<16x128xf32, #tpu.memory_space<vmem>>) attributes {dimension_semantics = [#tpu.dimension_semantics<parallel>, #tpu.dimension_semantics<arbitrary>], iteration_bounds = array<i64: 1, 1>, scalar_prefetch = 0 : i64, scratch_operands = 1 : i64, tpu.core_type = #tpu.core_type<tc>, window_params = [{transform_indices = @transform_0, window_bounds = array<i64: 16, 128>}, {transform_indices = @transform_1, window_bounds = array<i64: 128, 128>}, {pipeline_mode = #tpu.pipeline_mode<synchronous>, transform_indices = @transform_2, window_bounds = array<i64: 128, 256>}, {pipeline_mode = #tpu.pipeline_mode<synchronous>, transform_indices = @transform_3, window_bounds = array<i64: 1, 256>}, {pipeline_mode = #tpu.pipeline_mode<synchronous>, transform_indices = @transform_4, window_bounds = array<i64: 256, 128>}, {pipeline_mode = #tpu.pipeline_mode<synchronous>, transform_indices = @transform_5, window_bounds = array<i64: 1, 128>}, {pipeline_mode = #tpu.pipeline_mode<synchronous>, transform_indices = @transform_6, window_bounds = array<i64: 128, 128>}, {pipeline_mode = #tpu.pipeline_mode<synchronous>, transform_indices = @transform_7, window_bounds = array<i64: 1, 128>}, {transform_indices = @transform_8, window_bounds = array<i64: 16, 128>}]} {
    %c0_i32 = arith.constant 0 : i32
    %0 = arith.cmpi eq, %arg1, %c0_i32 : i32
    %1 = arith.extui %0 : i1 to i32
    %c0_i32_0 = arith.constant 0 : i32
    %2 = arith.cmpi ne, %1, %c0_i32_0 : i32
    scf.if %2 {
      %cst_10 = arith.constant 0.000000e+00 : f32
      %12 = vector.broadcast %cst_10 : f32 to vector<16x128xf32>
      %c0_11 = arith.constant 0 : index
      %c0_12 = arith.constant 0 : index
      %13 = vector.load %arg11[%c0_11, %c0_12] : memref<16x128xf32, #tpu.memory_space<vmem>>, vector<16x128xf32>
      tpu.vector_store %arg11[%c0_11, %c0_12], %12 {strides = array<i32>} : memref<16x128xf32, #tpu.memory_space<vmem>>, vector<16x128xf32>,
    } else {
    }
    %c0 = arith.constant 0 : index
    %c0_1 = arith.constant 0 : index
    %3 = vector.load %arg11[%c0, %c0_1] : memref<16x128xf32, #tpu.memory_space<vmem>>, vector<16x128xf32>
    %c0_2 = arith.constant 0 : index
    %c0_3 = arith.constant 0 : index
    %4 = vector.load %arg2[%c0_2, %c0_3] : memref<16x128xbf16, #tpu.memory_space<vmem>>, vector<16x128xbf16>
    %c0_4 = arith.constant 0 : index
    %c0_5 = arith.constant 0 : index
    %5 = vector.load %arg3[%c0_4, %c0_5] : memref<128x128xbf16, #tpu.memory_space<vmem>>, vector<128x128xbf16>
    %cst = arith.constant dense<0.000000e+00> : vector<16x128xf32>
    %6 = tpu.matmul %4, %5, %cst {dimension_numbers = #tpu.dot_dimension_numbers<[1], [0], [0], [1], [0, 0, 1, 1], [], []>} : vector<16x128xbf16>, vector<128x128xbf16>, vector<16x128xf32> -> vector<16x128xf32>
    %7 = arith.addf %3, %6 : vector<16x128xf32>
    %c0_6 = arith.constant 0 : index
    %c0_7 = arith.constant 0 : index
    %8 = vector.load %arg11[%c0_6, %c0_7] : memref<16x128xf32, #tpu.memory_space<vmem>>, vector<16x128xf32>
    tpu.vector_store %arg11[%c0_6, %c0_7], %7 {strides = array<i32>} : memref<16x128xf32, #tpu.memory_space<vmem>>, vector<16x128xf32>,
    %c0_i32_8 = arith.constant 0 : i32
    %9 = arith.cmpi eq, %arg1, %c0_i32_8 : i32
    %10 = arith.extui %9 : i1 to i32
    %c0_i32_9 = arith.constant 0 : i32
    %11 = arith.cmpi ne, %10, %c0_i32_9 : i32
    scf.if %11 {
      %c0_10 = arith.constant 0 : index
      %c0_11 = arith.constant 0 : index
      %12 = vector.load %arg11[%c0_10, %c0_11] : memref<16x128xf32, #tpu.memory_space<vmem>>, vector<16x128xf32>
      %c0_12 = arith.constant 0 : index
      %c0_13 = arith.constant 0 : index
      %13 = vector.load %arg4[%c0_12, %c0_13] : memref<128x256xf32, #tpu.memory_space<vmem>>, vector<128x256xf32>
      %cst_14 = arith.constant dense<0.000000e+00> : vector<16x256xf32>
      %14 = tpu.matmul %12, %13, %cst_14 {dimension_numbers = #tpu.dot_dimension_numbers<[1], [0], [0], [1], [0, 0, 1, 1], [], []>} : vector<16x128xf32>, vector<128x256xf32>, vector<16x256xf32> -> vector<16x256xf32>
      %c0_15 = arith.constant 0 : index
      %c0_16 = arith.constant 0 : index
      %15 = vector.load %arg5[%c0_15, %c0_16] : memref<1x256xf32, #tpu.memory_space<vmem>>, vector<1x256xf32>
      %16 = vector.broadcast %15 : vector<1x256xf32> to vector<16x256xf32>
      %17 = arith.addf %14, %16 : vector<16x256xf32>
      %cst_17 = arith.constant 0.000000e+00 : f32
      %18 = vector.broadcast %cst_17 : f32 to vector<16x256xf32>
      %19 = arith.maximumf %17, %18 : vector<16x256xf32>
      %c0_18 = arith.constant 0 : index
      %c0_19 = arith.constant 0 : index
      %20 = vector.load %arg6[%c0_18, %c0_19] : memref<256x128xf32, #tpu.memory_space<vmem>>, vector<256x128xf32>
      %cst_20 = arith.constant dense<0.000000e+00> : vector<16x128xf32>
      %21 = tpu.matmul %19, %20, %cst_20 {dimension_numbers = #tpu.dot_dimension_numbers<[1], [0], [0], [1], [0, 0, 1, 1], [], []>} : vector<16x256xf32>, vector<256x128xf32>, vector<16x128xf32> -> vector<16x128xf32>
      %c0_21 = arith.constant 0 : index
      %c0_22 = arith.constant 0 : index
      %22 = vector.load %arg7[%c0_21, %c0_22] : memref<1x128xf32, #tpu.memory_space<vmem>>, vector<1x128xf32>
      %23 = vector.broadcast %22 : vector<1x128xf32> to vector<16x128xf32>
      %24 = arith.addf %21, %23 : vector<16x128xf32>
      %cst_23 = arith.constant 0.000000e+00 : f32
      %25 = vector.broadcast %cst_23 : f32 to vector<16x128xf32>
      %26 = arith.maximumf %24, %25 : vector<16x128xf32>
      %c0_24 = arith.constant 0 : index
      %c0_25 = arith.constant 0 : index
      %27 = vector.load %arg8[%c0_24, %c0_25] : memref<128x128xf32, #tpu.memory_space<vmem>>, vector<128x128xf32>
      %cst_26 = arith.constant dense<0.000000e+00> : vector<16x128xf32>
      %28 = tpu.matmul %26, %27, %cst_26 {dimension_numbers = #tpu.dot_dimension_numbers<[1], [0], [0], [1], [0, 0, 1, 1], [], []>} : vector<16x128xf32>, vector<128x128xf32>, vector<16x128xf32> -> vector<16x128xf32>
      %c0_27 = arith.constant 0 : index
      %c0_28 = arith.constant 0 : index
      %29 = vector.load %arg9[%c0_27, %c0_28] : memref<1x128xf32, #tpu.memory_space<vmem>>, vector<1x128xf32>
      %30 = vector.broadcast %29 : vector<1x128xf32> to vector<16x128xf32>
      %31 = arith.addf %28, %30 : vector<16x128xf32>
      %c0_29 = arith.constant 0 : index
      %c0_30 = arith.constant 0 : index
      %32 = vector.load %arg10[%c0_29, %c0_30] : memref<16x128xf32, #tpu.memory_space<vmem>>, vector<16x128xf32>
      tpu.vector_store %arg10[%c0_29, %c0_30], %31 {strides = array<i32>} : memref<16x128xf32, #tpu.memory_space<vmem>>, vector<16x128xf32>,
    } else {
    }
    return
  }
  func.func @transform_0(%arg0: i32, %arg1: i32) -> (i32, i32) {
    %c0_i32 = arith.constant 0 : i32
    return %arg0, %arg1 : i32, i32
  }
  func.func @transform_1(%arg0: i32, %arg1: i32) -> (i32, i32) {
    %c0_i32 = arith.constant 0 : i32
    %c0_i32_0 = arith.constant 0 : i32
    return %arg1, %c0_i32 : i32, i32
  }
  func.func @transform_2(%arg0: i32, %arg1: i32) -> (i32, i32) {
    %c0_i32 = arith.constant 0 : i32
    %c0_i32_0 = arith.constant 0 : i32
    %c0_i32_1 = arith.constant 0 : i32
    return %c0_i32, %c0_i32_0 : i32, i32
  }
  func.func @transform_3(%arg0: i32, %arg1: i32) -> (i32, i32) {
    %c0_i32 = arith.constant 0 : i32
    %c0_i32_0 = arith.constant 0 : i32
    %c0_i32_1 = arith.constant 0 : i32
    return %c0_i32, %c0_i32_0 : i32, i32
  }
  func.func @transform_4(%arg0: i32, %arg1: i32) -> (i32, i32) {
    %c0_i32 = arith.constant 0 : i32
    %c0_i32_0 = arith.constant 0 : i32
    %c0_i32_1 = arith.constant 0 : i32
    return %c0_i32, %c0_i32_0 : i32, i32
  }
  func.func @transform_5(%arg0: i32, %arg1: i32) -> (i32, i32) {
    %c0_i32 = arith.constant 0 : i32
    %c0_i32_0 = arith.constant 0 : i32
    %c0_i32_1 = arith.constant 0 : i32
    return %c0_i32, %c0_i32_0 : i32, i32
  }
  func.func @transform_6(%arg0: i32, %arg1: i32) -> (i32, i32) {
    %c0_i32 = arith.constant 0 : i32
    %c0_i32_0 = arith.constant 0 : i32
    %c0_i32_1 = arith.constant 0 : i32
    return %c0_i32, %c0_i32_0 : i32, i32
  }
  func.func @transform_7(%arg0: i32, %arg1: i32) -> (i32, i32) {
    %c0_i32 = arith.constant 0 : i32
    %c0_i32_0 = arith.constant 0 : i32
    %c0_i32_1 = arith.constant 0 : i32
    return %c0_i32, %c0_i32_0 : i32, i32
  }
  func.func @transform_8(%arg0: i32, %arg1: i32) -> (i32, i32) {
    %c0_i32 = arith.constant 0 : i32
    %c0_i32_0 = arith.constant 0 : i32
    return %arg0, %c0_i32 : i32, i32
  }
}

</mosaic_0001>

<bundles_post_ra>
// kernel: tpu_custom_call.1
= control target key start
LH: loop header
LB: loop body
LE: loop exit
PB: predicated region body
PF: predicated region fallthrough
CT: control target
= control target key end

     0   :  { %13 = vsyncpa [#allocation4], 0  ;;  %s1159_s0 = inlined_call_operand.hbm [shape: bf16[16,128], index: 0, kind: input, shape index: {}]   ;;  %s1160_s1 = inlined_call_operand.hbm [shape: bf16[128,128], index: 1, kind: input, shape index: {}]   ;;  %s1161_s2 = inlined_call_operand.hbm [shape: f32[128,256], index: 2, kind: input, shape index: {}]   ;;  %s1162_s3 = inlined_call_operand.vmem [shape: f32[1,256], index: 3, kind: input, shape index: {}]   ;;  %s1163_s4 = inlined_call_operand.hbm [shape: f32[256,128], index: 4, kind: input, shape index: {}]   ;;  %s1164_s5 = inlined_call_operand.vmem [shape: f32[1,128], index: 5, kind: input, shape index: {}]   ;;  %s1165_s6 = inlined_call_operand.hbm [shape: f32[128,128], index: 6, kind: input, shape index: {}]   ;;  %s1166_s7 = inlined_call_operand.vmem [shape: f32[1,128], index: 7, kind: input, shape index: {}]   ;;  %s1167_s8 = inlined_call_operand.hbm [shape: f32[16,128], index: 8, kind: output, shape index: {}]  }
   0x1   :  { %14 = vsyncpa [#allocation7], 0 }
   0x2   :  { %15 = vsyncpa [#allocation10], 0 }
   0x3   :  { %16 = vsyncpa [#allocation5], 0  ;;  %s979_s27 = smov [#allocation6]   ;;  %s980_s29 = smov [#allocation9]  }
   0x4   :  { %s34_s28 = sshll.u32 %s979_s27, 4  ;;  %s60_s30 = sshll.u32 %s980_s29, 4  ;;  %s35_s28 = int_to_ptr.vmem [resolvable:$true] %s34_s28  ;;  %s1038_s30 = int_to_ptr.vmem [resolvable:$true] %s60_s30 }
   0x5   :  { %s839_s11 = scalar_lea.hbm %s1160_s1, 1024 }
   0x6   :  { %p840_p0 = scmp.ne.s32.totalorder %s1160_s1, %s839_s11  ;;  %p843_p1 = scmp.lt.u32.totalorder %s839_s11, %s1160_s1 }
   0x8   :  { %p845_p2 = pnand %p843_p1, %p840_p0 }
   0xa   :  { %848 = shalt.err (!%p845_p2)
}
   0xb   :  { %s849_s16 = scalar_lea.vmem %s35_s28, 1024  ;;  %p854_p4 = scmp.lt.s32.totalorder %s35_s28, %s35_s28 }
   0xc   :  { %p850_p3 = scmp.ne.s32.totalorder %s35_s28, %s849_s16  ;;  %p855_p5 = scmp.lt.s32.totalorder %s849_s16, %s849_s16 }
   0xe   :  { %p856_p6 = por %p855_p5, %p854_p4 }
  0x10   :  { %p857_p7 = pnand %p856_p6, %p850_p3 }
  0x12   :  { %860 = shalt.err (!%p857_p7)
}
  0x13   :  { %s981_s17 = smov 64   ;;  %s982_s18 = smov 4  }
  0x14   :  { %40 = dma.hbm_to_vmem [thread:$0]  %s1160_s1, 1024, %s35_s28, [#allocation7], %s981_s17, %s981_s17, %s982_s18  }
  0x15   :  { %s861_s23 = scalar_lea.hbm %s1163_s4, 4096 }
  0x16   :  { %p862_p8 = scmp.ne.s32.totalorder %s1163_s4, %s861_s23  ;;  %p865_p9 = scmp.lt.u32.totalorder %s861_s23, %s1163_s4 }
  0x18   :  { %p867_p10 = pnand %p865_p9, %p862_p8 }
  0x1a   :  { %870 = shalt.err (!%p867_p10)
}
  0x1b   :  { %s871_s29 = scalar_lea.vmem %s1038_s30, 4096  ;;  %p876_p12 = scmp.lt.s32.totalorder %s1038_s30, %s1038_s30 }
  0x1c   :  { %p872_p11 = scmp.ne.s32.totalorder %s1038_s30, %s871_s29  ;;  %p877_p13 = scmp.lt.s32.totalorder %s871_s29, %s871_s29 }
  0x1e   :  { %p878_p0 = por %p877_p13, %p876_p12 }
  0x20   :  { %p879_p1 = pnand %p878_p0, %p872_p11 }
  0x22   :  { %882 = shalt.err (!%p879_p1)
}
  0x23   :  { %s983_s1 = smov 128   ;;  %s984_s28 = smov 8  }
  0x24   :  { %66 = dma.hbm_to_vmem [thread:$0]  %s1163_s4, 4096, %s1038_s30, [#allocation10], %s983_s1, %s983_s1, %s984_s28  }
  0x25   :  { %s985_s11 = smov [#allocation3]   ;;  %s986_s13 = smov [#allocation8]  }
  0x26   :  { %s22_s12 = sshll.u32 %s985_s11, 4  ;;  %s46_s14 = sshll.u32 %s986_s13, 4  ;;  %s23_s12 = int_to_ptr.vmem [resolvable:$true] %s22_s12  ;;  %s1075_s14 = int_to_ptr.vmem [resolvable:$true] %s46_s14 }
  0x27   :  { %s883_s19 = scalar_lea.hbm %s1159_s0, 128 }
  0x28   :  { %p884_p2 = scmp.ne.s32.totalorder %s1159_s0, %s883_s19  ;;  %p887_p3 = scmp.lt.u32.totalorder %s883_s19, %s1159_s0 }
  0x2a   :  { %p889_p4 = pnand %p887_p3, %p884_p2 }
  0x2c   :  { %892 = shalt.err (!%p889_p4)
}
  0x2d   :  { %s893_s4 = scalar_lea.vmem %s23_s12, 128  ;;  %p898_p6 = scmp.lt.s32.totalorder %s23_s12, %s23_s12 }
  0x2e   :  { %p894_p5 = scmp.ne.s32.totalorder %s23_s12, %s893_s4  ;;  %p899_p7 = scmp.lt.s32.totalorder %s893_s4, %s893_s4 }
  0x30   :  { %p900_p8 = por %p899_p7, %p898_p6 }
  0x32   :  { %p901_p9 = pnand %p900_p8, %p894_p5 }
  0x34   :  { %904 = shalt.err (!%p901_p9)
}
  0x35   :  { %28 = dma.hbm_to_vmem [thread:$0]  %s1159_s0, 128, %s23_s12, [#allocation4], %s981_s17, %s981_s17, %s982_s18  }
  0x36   :  { %s905_s27 = scalar_lea.hbm %s1161_s2, 4096 }
  0x37   :  { %p906_p10 = scmp.ne.s32.totalorder %s1161_s2, %s905_s27  ;;  %p909_p11 = scmp.lt.u32.totalorder %s905_s27, %s1161_s2 }
  0x39   :  { %p911_p12 = pnand %p909_p11, %p906_p10 }
  0x3b   :  { %914 = shalt.err (!%p911_p12)
}
  0x3c   :  { %s915_s13 = scalar_lea.vmem %s1075_s14, 4096  ;;  %p920_p0 = scmp.lt.s32.totalorder %s1075_s14, %s1075_s14 }
  0x3d   :  { %p916_p13 = scmp.ne.s32.totalorder %s1075_s14, %s915_s13  ;;  %p921_p1 = scmp.lt.s32.totalorder %s915_s13, %s915_s13 }
  0x3f   :  { %p922_p2 = por %p921_p1, %p920_p0 }
  0x41   :  { %p923_p3 = pnand %p922_p2, %p916_p13 }
  0x43   :  { %926 = shalt.err (!%p923_p3)
}
  0x44   :  { %s987_s0 = smov 256   ;;  %s988_s17 = smov 16  }
  0x45   :  { %52 = dma.hbm_to_vmem [thread:$0]  %s1161_s2, 4096, %s1075_s14, [#allocation7], %s987_s0, %s987_s0, %s988_s17  }
  0x46   :  { %s989_s15 = smov [#allocation11]   ;;  %s927_s21 = scalar_lea.hbm %s1165_s6, 2048 }
  0x47   :  { %s74_s16 = sshll.u32 %s989_s15, 4  ;;  %p928_p4 = scmp.ne.s32.totalorder %s1165_s6, %s927_s21  ;;  %s75_s16 = int_to_ptr.vmem [resolvable:$true] %s74_s16 }
  0x48   :  { %p931_p5 = scmp.lt.u32.totalorder %s927_s21, %s1165_s6 }
  0x4a   :  { %p933_p6 = pnand %p931_p5, %p928_p4 }
  0x4c   :  { %936 = shalt.err (!%p933_p6)
}
  0x4d   :  { %s937_s24 = scalar_lea.vmem %s75_s16, 2048  ;;  %p942_p8 = scmp.lt.s32.totalorder %s75_s16, %s75_s16 }
  0x4e   :  { %p938_p7 = scmp.ne.s32.totalorder %s75_s16, %s937_s24  ;;  %p943_p9 = scmp.lt.s32.totalorder %s937_s24, %s937_s24 }
  0x50   :  { %p944_p10 = por %p943_p9, %p942_p8 }
  0x52   :  { %p945_p11 = pnand %p944_p10, %p938_p7 }
  0x54   :  { %948 = shalt.err (!%p945_p11)
}
  0x55   :  { %80 = dma.hbm_to_vmem [thread:$0]  %s1165_s6, 2048, %s75_s16, [#allocation10], %s983_s1, %s983_s1, %s984_s28  }
  0x56   :  { %971 = dma.done.wait [#allocation4], 128  }
  0x57   :  { %972 = vsyncadd [#allocation4], 4294967168 }
  0x58   :  { %973 = dma.done.wait [#allocation7], 5120  }
  0x59   :  { %974 = vsyncadd [#allocation7], 4294962176 }
  0x5a   :  { %975 = dma.done.wait [#allocation10], 6144  }
  0x5b   :  { %976 = vsyncadd [#allocation10], 4294961152  ;;  %v990_v0 = vmov 0.0   ;;  %vm991_vm0 = vmmov 0   ;;  %v830_v1 = vld [vmem:[#allocation6] sm:$0xff]   ;;  %v831_v2 = vld [vmem:[#allocation6 + $0x8] sm:$0xff]  }
  0x5c   :  { %665 = vmatprep.subr.bf16.mxu0 %v990_v0  ;;  %681 = vmatprep.mubr.msk.bf16.mxu0 %vm991_vm0, %v990_v0  ;;  %v832_v3 = vld [vmem:[#allocation6 + $0x10] sm:$0xff]   ;;  %v833_v4 = vld [vmem:[#allocation6 + $0x18] sm:$0xff]   ;;  %v230_v5 = vld [vmem:[#allocation8 + $0x8] sm:$0xff]  ;;  %s992_s9 = smov [#allocation12]  }
  0x5d   :  { %337 = vmatprep.mubr.f32.mxu1 %v990_v0  ;;  %666 = vmatpush3.bf16.msra.mxu0 %v830_v1  ;;  %v232_v6 = vld [vmem:[#allocation8 + $0x18] sm:$0xff]  ;;  %v229_v7 = vld [vmem:[#allocation8] sm:$0xff]  ;;  %v231_v9 = vld [vmem:[#allocation8 + $0x10] sm:$0xff]  ;;  %s575_s10 = sshll.u32 %s992_s9, 4  ;;  %s576_s10 = int_to_ptr.vmem [resolvable:$true] %s575_s10 }
  0x5e   :  { %667 = vmatprep.subr.bf16.mxu0 %v990_v0  ;;  %v720_v8 = vpack.c.bf16 %v232_v6, %v230_v5  ;;  %v234_v10 = vld [vmem:[#allocation8 + $0x28] sm:$0xff]  ;;  %v236_v11 = vld [vmem:[#allocation8 + $0x38] sm:$0xff]  ;;  %v722_v12 = vpack.c.bf16 %v231_v9, %v229_v7  ;;  %v233_v14 = vld [vmem:[#allocation8 + $0x20] sm:$0xff]  ;;  %p954_p13 = scmp.lt.s32.totalorder %s576_s10, %s576_s10 }
  0x5f   :  { %v724_v13 = vpack.c.bf16 %v236_v11, %v234_v10  ;;  %v235_v15 = vld [vmem:[#allocation8 + $0x30] sm:$0xff]  ;;  %v238_v16 = vld [vmem:[#allocation8 + $0x48] sm:$0xff]  ;;  %v240_v17 = vld [vmem:[#allocation8 + $0x58] sm:$0xff] }
  0x60   :  { %721 = vmatprep.subr.bf16.mxu1 %v720_v8  ;;  %v726_v18 = vpack.c.bf16 %v235_v15, %v233_v14  ;;  %v834_v19 = vld [vmem:[#allocation6 + $0x20] sm:$0xff]   ;;  %v728_v20 = vpack.c.bf16 %v240_v17, %v238_v16  ;;  %v239_v22 = vld [vmem:[#allocation8 + $0x50] sm:$0xff]  ;;  %v242_v23 = vld [vmem:[#allocation8 + $0x68] sm:$0xff] }
  0x61   :  { %668 = vmatpush3.bf16.msra.mxu0 %v831_v2  ;;  %723 = vmatpush1.bf16.msra.mxu1 %v722_v12  ;;  %v237_v21 = vld [vmem:[#allocation8 + $0x40] sm:$0xff]  ;;  %v244_v24 = vld [vmem:[#allocation8 + $0x78] sm:$0xff]  ;;  %v835_v26 = vld [vmem:[#allocation6 + $0x28] sm:$0xff]  }
  0x62   :  { %669 = vmatprep.subr.bf16.mxu0 %v990_v0  ;;  %725 = vmatprep.subr.bf16.mxu1 %v724_v13  ;;  %v730_v25 = vpack.c.bf16 %v239_v22, %v237_v21  ;;  %v732_v27 = vpack.c.bf16 %v244_v24, %v242_v23  ;;  %v241_v28 = vld [vmem:[#allocation8 + $0x60] sm:$0xff]  ;;  %v243_v29 = vld [vmem:[#allocation8 + $0x70] sm:$0xff]  ;;  %v246_v30 = vld [vmem:[#allocation8 + $0x88] sm:$0xff] }
  0x63   :  { %v248_v31 = vld [vmem:[#allocation8 + $0x98] sm:$0xff]  ;;  %v734_v32 = vpack.c.bf16 %v243_v29, %v241_v28  ;;  %v836_v33 = vld [vmem:[#allocation6 + $0x30] sm:$0xff]   ;;  %v245_v35 = vld [vmem:[#allocation8 + $0x80] sm:$0xff] }
  0x64   :  { %v736_v34 = vpack.c.bf16 %v248_v31, %v246_v30  ;;  %v247_v36 = vld [vmem:[#allocation8 + $0x90] sm:$0xff]  ;;  %v250_v37 = vld [vmem:[#allocation8 + $0xa8] sm:$0xff]  ;;  %v252_v38 = vld [vmem:[#allocation8 + $0xb8] sm:$0xff] }
  0x65   :  { %670 = vmatpush3.bf16.msra.mxu0 %v832_v3  ;;  %727 = vmatpush1.bf16.msra.mxu1 %v726_v18  ;;  %v738_v39 = vpack.c.bf16 %v247_v36, %v245_v35  ;;  %v837_v40 = vld [vmem:[#allocation6 + $0x38] sm:$0xff]   ;;  %v740_v41 = vpack.c.bf16 %v252_v38, %v250_v37  ;;  %v249_v42 = vld [vmem:[#allocation8 + $0xa0] sm:$0xff]  ;;  %v251_v43 = vld [vmem:[#allocation8 + $0xb0] sm:$0xff] }
  0x66   :  { %671 = vmatprep.subr.bf16.mxu0 %v990_v0  ;;  %729 = vmatprep.subr.bf16.mxu1 %v728_v20  ;;  %v254_v44 = vld [vmem:[#allocation8 + $0xc8] sm:$0xff]  ;;  %v256_v45 = vld [vmem:[#allocation8 + $0xd8] sm:$0xff]  ;;  %v742_v47 = vpack.c.bf16 %v251_v43, %v249_v42  ;;  %v253_v49 = vld [vmem:[#allocation8 + $0xc0] sm:$0xff] }
  0x67   :  { %v838_v46 = vld [vmem:[#allocation3] sm:$0xff]   ;;  %v744_v48 = vpack.c.bf16 %v256_v45, %v254_v44  ;;  %v255_v50 = vld [vmem:[#allocation8 + $0xd0] sm:$0xff]  ;;  %v258_v51 = vld [vmem:[#allocation8 + $0xe8] sm:$0xff] }
  0x68   :  { %v260_v52 = vld [vmem:[#allocation8 + $0xf8] sm:$0xff]  ;;  %v746_v53 = vpack.c.bf16 %v255_v50, %v253_v49  ;;  %v257_v55 = vld [vmem:[#allocation8 + $0xe0] sm:$0xff]  ;;  %v259_v56 = vld [vmem:[#allocation8 + $0xf0] sm:$0xff] }
  0x69   :  { %672 = vmatpush3.bf16.msra.mxu0 %v833_v4  ;;  %731 = vmatpush1.bf16.msra.mxu1 %v730_v25  ;;  %v748_v54 = vpack.c.bf16 %v260_v52, %v258_v51  ;;  %v750_v57 = vpack.c.bf16 %v259_v56, %v257_v55  ;;  %v370_v58 = vld [vmem:[#allocation9 + $0x80] sm:$0xff]  ;;  %v371_v59 = vld [vmem:[#allocation9 + $0x88] sm:$0xff]  ;;  %v372_v63 = vld [vmem:[#allocation9 + $0x90] sm:$0xff] }
  0x6a   :  { %673 = vmatprep.subr.bf16.mxu0 %v990_v0  ;;  %733 = vmatprep.subr.bf16.mxu1 %v732_v27  ;;  %v354_v60 = vld [vmem:[#allocation9] sm:$0xff]  ;;  %v752_v61 = vpack.c.bf16 %v371_v59, %v370_v58  ;;  %v355_v62 = vld [vmem:[#allocation9 + $0x8] sm:$0xff]  ;;  %v373_v1 = vld [vmem:[#allocation9 + $0x98] sm:$0xff] }
  0x6b   :  { %v754_v2 = vpack.c.bf16 %v355_v62, %v354_v60  ;;  %v756_v3 = vpack.c.bf16 %v373_v1, %v372_v63  ;;  %v356_v4 = vld [vmem:[#allocation9 + $0x10] sm:$0xff]  ;;  %v357_v5 = vld [vmem:[#allocation9 + $0x18] sm:$0xff]  ;;  %v374_v6 = vld [vmem:[#allocation9 + $0xa0] sm:$0xff] }
  0x6c   :  { %v375_v7 = vld [vmem:[#allocation9 + $0xa8] sm:$0xff]  ;;  %v758_v8 = vpack.c.bf16 %v357_v5, %v356_v4  ;;  %v358_v10 = vld [vmem:[#allocation9 + $0x20] sm:$0xff]  ;;  %v376_v12 = vld [vmem:[#allocation9 + $0xb0] sm:$0xff] }
  0x6d   :  { %674 = vmatpush3.bf16.msra.mxu0 %v834_v19  ;;  %735 = vmatpush1.bf16.msra.mxu1 %v734_v32  ;;  %v760_v9 = vpack.c.bf16 %v375_v7, %v374_v6  ;;  %v359_v11 = vld [vmem:[#allocation9 + $0x28] sm:$0xff]  ;;  %v377_v13 = vld [vmem:[#allocation9 + $0xb8] sm:$0xff]  ;;  %v360_v16 = vld [vmem:[#allocation9 + $0x30] sm:$0xff] }
  0x6e   :  { %675 = vmatprep.subr.bf16.mxu0 %v990_v0  ;;  %737 = vmatprep.subr.bf16.mxu1 %v736_v34  ;;  %v762_v14 = vpack.c.bf16 %v359_v11, %v358_v10  ;;  %v764_v15 = vpack.c.bf16 %v377_v13, %v376_v12  ;;  %v361_v17 = vld [vmem:[#allocation9 + $0x38] sm:$0xff]  ;;  %v378_v18 = vld [vmem:[#allocation9 + $0xc0] sm:$0xff]  ;;  %v379_v19 = vld [vmem:[#allocation9 + $0xc8] sm:$0xff] }
  0x6f   :  { %v766_v20 = vpack.c.bf16 %v361_v17, %v360_v16  ;;  %v768_v21 = vpack.c.bf16 %v379_v19, %v378_v18  ;;  %v362_v22 = vld [vmem:[#allocation9 + $0x40] sm:$0xff]  ;;  %v363_v23 = vld [vmem:[#allocation9 + $0x48] sm:$0xff]  ;;  %v380_v24 = vld [vmem:[#allocation9 + $0xd0] sm:$0xff] }
  0x70   :  { %v381_v25 = vld [vmem:[#allocation9 + $0xd8] sm:$0xff]  ;;  %v364_v28 = vld [vmem:[#allocation9 + $0x50] sm:$0xff]  ;;  %v382_v30 = vld [vmem:[#allocation9 + $0xe0] sm:$0xff] }
  0x71   :  { %676 = vmatpush3.bf16.msra.mxu0 %v835_v26  ;;  %739 = vmatpush1.bf16.msra.mxu1 %v738_v39  ;;  %v770_v26 = vpack.c.bf16 %v363_v23, %v362_v22  ;;  %v772_v27 = vpack.c.bf16 %v381_v25, %v380_v24  ;;  %v365_v29 = vld [vmem:[#allocation9 + $0x58] sm:$0xff]  ;;  %v383_v31 = vld [vmem:[#allocation9 + $0xe8] sm:$0xff]  ;;  %v366_v38 = vld [vmem:[#allocation9 + $0x60] sm:$0xff] }
  0x72   :  { %677 = vmatprep.subr.bf16.mxu0 %v990_v0  ;;  %741 = vmatprep.subr.bf16.mxu1 %v740_v41  ;;  %v774_v32 = vpack.c.bf16 %v365_v29, %v364_v28  ;;  %v367_v39 = vld [vmem:[#allocation9 + $0x68] sm:$0xff]  ;;  %v384_v41 = vld [vmem:[#allocation9 + $0xf0] sm:$0xff]  ;;  %v385_v42 = vld [vmem:[#allocation9 + $0xf8] sm:$0xff] }
  0x73   :  { %v780_v43 = vpack.c.bf16 %v385_v42, %v384_v41  ;;  %v368_v44 = vld [vmem:[#allocation9 + $0x70] sm:$0xff]  ;;  %v369_v45 = vld [vmem:[#allocation9 + $0x78] sm:$0xff]  ;;  %v474_v52 = vld [vmem:[#allocation11 + $0x20] sm:$0xff] }
  0x74   :  { %v472_v49 = vld [vmem:[#allocation11 + $0x10] sm:$0xff]  ;;  %v473_v51 = vld [vmem:[#allocation11 + $0x18] sm:$0xff]  ;;  %v478_v58 = vld [vmem:[#allocation11 + $0x40] sm:$0xff] }
  0x75   :  { %678 = vmatpush3.bf16.msra.mxu0 %v836_v33  ;;  %743 = vmatpush1.bf16.msra.mxu1 %v742_v47  ;;  %v776_v33 = vpack.c.bf16 %v383_v31, %v382_v30  ;;  %v470_v47 = vld [vmem:[#allocation11] sm:$0xff]  ;;  %v476_v55 = vld [vmem:[#allocation11 + $0x30] sm:$0xff]  ;;  %v477_v56 = vld [vmem:[#allocation11 + $0x38] sm:$0xff] }
  0x76   :  { %679 = vmatprep.subr.bf16.mxu0 %v990_v0  ;;  %745 = vmatprep.subr.bf16.mxu1 %v744_v48  ;;  %v471_v48 = vld [vmem:[#allocation11 + $0x8] sm:$0xff]  ;;  %v261_v1 = vld [vmem:[%s1162_s3] sm:$0x3]  ;;  %v480_v17 = vld [vmem:[#allocation11 + $0x50] sm:$0xff] }
  0x77   :  { %v784_v50 = vpack.c.bf16 %v471_v48, %v470_v47  ;;  %v479_v59 = vld [vmem:[#allocation11 + $0x48] sm:$0xff]  ;;  %v481_v18 = vld [vmem:[#allocation11 + $0x58] sm:$0xff]  ;;  %v484_v23 = vld [vmem:[#allocation11 + $0x70] sm:$0xff] }
  0x78   :  { %v800_v60 = vpack.c.bf16 %v479_v59, %v478_v58  ;;  %v804_v19 = vpack.c.bf16 %v481_v18, %v480_v17  ;;  %v485_v24 = vld [vmem:[#allocation11 + $0x78] sm:$0xff] }
  0x79   :  { %680 = vmatpush3.bf16.msra.mxu0 %v837_v40  ;;  %747 = vmatpush1.bf16.msra.mxu1 %v746_v53  ;;  %v778_v40 = vpack.c.bf16 %v367_v39, %v366_v38  ;;  %v475_v53 = vld [vmem:[#allocation11 + $0x28] sm:$0xff]  ;;  %v812_v25 = vpack.c.bf16 %v485_v24, %v484_v23 }
  0x7a   :  { %749 = vmatprep.subr.bf16.mxu1 %v748_v54  ;;  %753 = vmatprep.subr.bf16.mxu0 %v752_v61  ;;  %v792_v54 = vpack.c.bf16 %v475_v53, %v474_v52  ;;  %v263_v61 = vlaneseq }
  0x7c   :  { %682 = vmatmul.mubr.bf16.vlgmr.msra.gmra.mrb[0].mxu0 %v838_v46  ;;  %v782_v46 = vpack.c.bf16 %v369_v45, %v368_v44  ;;  %v264_v62 = vshrl.u32 %v263_v61, 7 }
  0x7d   :  { %751 = vmatpush1.bf16.msra.mxu1 %v750_v57  ;;  %755 = vmatpush3.bf16.msra.mxu0 %v754_v2  ;;  %v796_v57 = vpack.c.bf16 %v477_v56, %v476_v55 }
  0x7e   :  { %757 = vmatprep.subr.bf16.mxu0 %v756_v3  ;;  %785 = vmatprep.subr.bf16.mxu1 %v784_v50  ;;  %v265_v63 = vsub.s32 0, %v264_v62  ;;  %v269_v2 = vsub.s32 1, %v264_v62 }
  0x80   :  { %v266_v3 = vrot.slane %v261_v1, %v265_v63  ;;  %v270_v4 = vrot.slane %v261_v1, %v269_v2 }
  0x81   :  { %759 = vmatpush3.bf16.msra.mxu0 %v758_v8 }
  0x82   :  { %761 = vmatprep.subr.bf16.mxu0 %v760_v9 }
  0x85   :  { %763 = vmatpush3.bf16.msra.mxu0 %v762_v14 }
  0x86   :  { %765 = vmatprep.subr.bf16.mxu0 %v764_v15 }
  0x89   :  { %767 = vmatpush3.bf16.msra.mxu0 %v766_v20  ;;  %v482_v20 = vld [vmem:[#allocation11 + $0x60] sm:$0xff] }
  0x8a   :  { %769 = vmatprep.subr.bf16.mxu0 %v768_v21  ;;  %v483_v21 = vld [vmem:[#allocation11 + $0x68] sm:$0xff] }
  0x8b   :  { %v808_v22 = vpack.c.bf16 %v483_v21, %v482_v20 }
  0x8d   :  { %771 = vmatpush3.bf16.msra.mxu0 %v770_v26 }
  0x8e   :  { %773 = vmatprep.subr.bf16.mxu0 %v772_v27  ;;  %v598_v27 = vld [vmem:[%s1164_s5] ss:$0 sm:$0xff]  ;;  %s949_s5 = scalar_lea.vmem %s576_s10, 256 }
  0x8f   :  { %p950_p12 = scmp.ne.s32.totalorder %s576_s10, %s949_s5  ;;  %p955_p0 = scmp.lt.s32.totalorder %s949_s5, %s949_s5 }
  0x91   :  { %775 = vmatpush3.bf16.msra.mxu0 %v774_v32  ;;  %p956_p1 = por %p955_p0, %p954_p13 }
  0x92   :  { %777 = vmatprep.subr.bf16.mxu0 %v776_v33 }
  0x93   :  { %p957_p2 = pnand %p956_p1, %p950_p12 }
  0x95   :  { %779 = vmatpush3.bf16.msra.mxu0 %v778_v40 }
  0x96   :  { %781 = vmatprep.subr.bf16.mxu0 %v780_v43 }
  0x99   :  { %783 = vmatpush3.bf16.msra.mxu0 %v782_v46 }
 0x14f   :  { %v213_v34 = vpop.f32.mrb[0].mxu0 }
 0x150   :  { %v683_v35 = vpop.f32.mrb[1].mxu0  ;;  %338 = vmatmul.mubr.f32.vlgmr.msra.gmra.mrb[0].mxu1 %v213_v34 }
 0x151   :  { %v216_v36 = vpop.f32.mrb[2].mxu0  ;;  %343 = vmatprep.mubr.f32.mxu1 %v990_v0  ;;  %v788_v0 = vpack.c.bf16 %v473_v51, %v472_v49  ;;  %787 = vmatpush3.bf16.msra.mxu1 %v784_v50 }
 0x152   :  { %v684_v37 = vpop.f32.mrb[3].mxu0 }
 0x153   :  { %789 = vmatprep.subr.bf16.mxu1 %v788_v0  ;;  %v599_v37 = vld [vmem:[%s1166_s7] ss:$0 sm:$0xff] }
 0x154   :  { %344 = vmatmul.mubr.f32.gmra.mrb[2].mxu1 %v216_v36 }
 0x155   :  { %791 = vmatpush3.bf16.msra.mxu1 %v788_v0 }
 0x156   :  { %793 = vmatprep.subr.bf16.mxu1 %v792_v54 }
 0x159   :  { %795 = vmatpush3.bf16.msra.mxu1 %v792_v54 }
 0x15a   :  { %797 = vmatprep.subr.bf16.mxu1 %v796_v57 }
 0x15d   :  { %799 = vmatpush3.bf16.msra.mxu1 %v796_v57 }
 0x15e   :  { %801 = vmatprep.subr.bf16.mxu1 %v800_v60 }
 0x161   :  { %803 = vmatpush3.bf16.msra.mxu1 %v800_v60 }
 0x162   :  { %805 = vmatprep.subr.bf16.mxu1 %v804_v19 }
 0x165   :  { %807 = vmatpush3.bf16.msra.mxu1 %v804_v19 }
 0x166   :  { %809 = vmatprep.subr.bf16.mxu1 %v808_v22 }
 0x169   :  { %811 = vmatpush3.bf16.msra.mxu1 %v808_v22 }
 0x16a   :  { %813 = vmatprep.subr.bf16.mxu1 %v812_v25 }
 0x16d   :  { %815 = vmatpush3.bf16.msra.mxu1 %v812_v25 }
 0x223   :  { %v339_v5 = vpop.f32.mrb[0].mxu1 }
 0x224   :  { %v340_v6 = vadd.f32 %v339_v5, %v266_v3  ;;  %v341_v7 = vpop.f32.mrb[1].mxu1 }
 0x225   :  { %v342_v8 = vadd.f32 %v341_v7, %v270_v4 }
 0x226   :  { %v350_v11 = vmax.f32 %v340_v6, 0.0 }
 0x227   :  { %v351_v9 = vmax.f32 %v342_v8, 0.0  ;;  %v345_v10 = vpop.f32.mrb[2].mxu1 }
 0x228   :  { %v346_v12 = vadd.f32 %v345_v10, %v266_v3  ;;  %v347_v13 = vpop.f32.mrb[3].mxu1 }
 0x229   :  { %v348_v14 = vadd.f32 %v347_v13, %v270_v4  ;;  %457 = vmatprep.mubr.f32.mxu0 %v351_v9 }
 0x22a   :  { %458 = vmatmul.mubr.f32.vlgmr.msra.gmra.mrb[4].mxu0 %v350_v11  ;;  %v352_v16 = vmax.f32 %v346_v12, 0.0 }
 0x22b   :  { %v353_v15 = vmax.f32 %v348_v14, 0.0 }
 0x22d   :  { %462 = vmatprep.mubr.f32.mxu0 %v353_v15 }
 0x22e   :  { %463 = vmatmul.mubr.f32.gmra.mrb[6].mxu0 %v352_v16 }
 0x2fd   :  { %v641_v26 = vpop.f32.mrb[4].mxu0 }
 0x2fe   :  { %v642_v28 = vpop.f32.mrb[5].mxu0 }
 0x2ff   :  { %v643_v29 = vadd.f32 %v642_v28, %v641_v26 }
 0x301   :  { %v460_v30 = vadd.f32 %v643_v29, %v598_v27  ;;  %v644_v31 = vpop.f32.mrb[6].mxu0 }
 0x302   :  { %v645_v32 = vpop.f32.mrb[7].mxu0 }
 0x303   :  { %v468_v33 = vmax.f32 %v460_v30, 0.0  ;;  %v646_v34 = vadd.f32 %v645_v32, %v644_v31 }
 0x305   :  { %v465_v35 = vadd.f32 %v646_v34, %v598_v27  ;;  %717 = vmatprep.mubr.f32.mxu1 %v468_v33 }
 0x307   :  { %v469_v36 = vmax.f32 %v465_v35, 0.0 }
 0x309   :  { %718 = vmatmul.mubr.f32.vlgmr.msra.gmra.mrb[4].mxu1 %v469_v36 }
 0x3dc   :  { %v719_v38 = vpop.f32.mrb[4].mxu1 }
 0x3dd   :  { %v565_v39 = vadd.f32 %v719_v38, %v599_v37  ;;  %v559_v40 = vpop.f32.mrb[5].mxu1 }
 0x3de   :  { %v560_v41 = vadd.f32 %v599_v37, %v559_v40 }
 0x3df   :  { %569 = vst [vmem:[#allocation12 + $0x8] sm:$0xff] %v565_v39 }
 0x3e0   :  { %568 = vst [vmem:[#allocation12] sm:$0xff] %v560_v41 }
 0x3e1   :  { %960 = shalt.err (!%p957_p2)
}
 0x3e2   :  { %s961_s7 = scalar_lea.hbm %s1167_s8, 256 }
 0x3e3   :  { %p962_p3 = scmp.ne.s32.totalorder %s1167_s8, %s961_s7  ;;  %p965_p4 = scmp.lt.u32.totalorder %s961_s7, %s1167_s8 }
 0x3e5   :  { %p967_p5 = pnand %p965_p4, %p962_p3 }
 0x3e7   :  { %970 = shalt.err (!%p967_p5)
}
 0x3e8   :  { %581 = dma.vmem_to_hbm [thread:$0]  %s576_s10, 256, %s1167_s8, [#allocation5], %s983_s1, %s983_s1, %s984_s28  }
 0x3e9   :  { %977 = dma.done.wait [#allocation5], 256  }
 0x3ea   :  { %978 = vsyncadd [#allocation5], 4294967040 }
 0x3eb   :  { %585 = vsyncpa [#allocation4], 1 }
 0x3ec   :  { %586 = vsyncpa [#allocation7], 1 }
 0x3ed   :  { %587 = vsyncpa [#allocation10], 1 }
 0x3ee   :  { %588 = vsyncpa [#allocation5], 1 }

// kernel: tpu_custom_call.1
= control target key start
LH: loop header
LB: loop body
LE: loop exit
PB: predicated region body
PF: predicated region fallthrough
CT: control target
= control target key end

     0   :  { %13 = vsyncpa [#allocation4], 0  ;;  %s1159_s0 = inlined_call_operand.hbm [shape: bf16[16,128], index: 0, kind: input, shape index: {}]   ;;  %s1160_s1 = inlined_call_operand.hbm [shape: bf16[128,128], index: 1, kind: input, shape index: {}]   ;;  %s1161_s2 = inlined_call_operand.hbm [shape: f32[128,256], index: 2, kind: input, shape index: {}]   ;;  %s1162_s3 = inlined_call_operand.vmem [shape: f32[1,256], index: 3, kind: input, shape index: {}]   ;;  %s1163_s4 = inlined_call_operand.hbm [shape: f32[256,128], index: 4, kind: input, shape index: {}]   ;;  %s1164_s5 = inlined_call_operand.vmem [shape: f32[1,128], index: 5, kind: input, shape index: {}]   ;;  %s1165_s6 = inlined_call_operand.hbm [shape: f32[128,128], index: 6, kind: input, shape index: {}]   ;;  %s1166_s7 = inlined_call_operand.vmem [shape: f32[1,128], index: 7, kind: input, shape index: {}]   ;;  %s1167_s8 = inlined_call_operand.hbm [shape: f32[16,128], index: 8, kind: output, shape index: {}]  }
   0x1   :  { %14 = vsyncpa [#allocation7], 0 }
   0x2   :  { %15 = vsyncpa [#allocation10], 0 }
   0x3   :  { %16 = vsyncpa [#allocation5], 0  ;;  %s979_s27 = smov [#allocation6]   ;;  %s980_s29 = smov [#allocation9]  }
   0x4   :  { %s34_s28 = sshll.u32 %s979_s27, 4  ;;  %s60_s30 = sshll.u32 %s980_s29, 4  ;;  %s35_s28 = int_to_ptr.vmem [resolvable:$true] %s34_s28  ;;  %s1038_s30 = int_to_ptr.vmem [resolvable:$true] %s60_s30 }
   0x5   :  { %s839_s11 = scalar_lea.hbm %s1160_s1, 1024 }
   0x6   :  { %p840_p0 = scmp.ne.s32.totalorder %s1160_s1, %s839_s11  ;;  %p843_p1 = scmp.lt.u32.totalorder %s839_s11, %s1160_s1 }
   0x8   :  { %p845_p2 = pnand %p843_p1, %p840_p0 }
   0xa   :  { %848 = shalt.err (!%p845_p2)
}
   0xb   :  { %s849_s16 = scalar_lea.vmem %s35_s28, 1024  ;;  %p854_p4 = scmp.lt.s32.totalorder %s35_s28, %s35_s28 }
   0xc   :  { %p850_p3 = scmp.ne.s32.totalorder %s35_s28, %s849_s16  ;;  %p855_p5 = scmp.lt.s32.totalorder %s849_s16, %s849_s16 }
   0xe   :  { %p856_p6 = por %p855_p5, %p854_p4 }
  0x10   :  { %p857_p7 = pnand %p856_p6, %p850_p3 }
  0x12   :  { %860 = shalt.err (!%p857_p7)
}
  0x13   :  { %s981_s17 = smov 64   ;;  %s982_s18 = smov 4  }
  0x14   :  { %40 = dma.hbm_to_vmem [thread:$0]  %s1160_s1, 1024, %s35_s28, [#allocation7], %s981_s17, %s981_s17, %s982_s18  }
  0x15   :  { %s861_s23 = scalar_lea.hbm %s1163_s4, 4096 }
  0x16   :  { %p862_p8 = scmp.ne.s32.totalorder %s1163_s4, %s861_s23  ;;  %p865_p9 = scmp.lt.u32.totalorder %s861_s23, %s1163_s4 }
  0x18   :  { %p867_p10 = pnand %p865_p9, %p862_p8 }
  0x1a   :  { %870 = shalt.err (!%p867_p10)
}
  0x1b   :  { %s871_s29 = scalar_lea.vmem %s1038_s30, 4096  ;;  %p876_p12 = scmp.lt.s32.totalorder %s1038_s30, %s1038_s30 }
  0x1c   :  { %p872_p11 = scmp.ne.s32.totalorder %s1038_s30, %s871_s29  ;;  %p877_p13 = scmp.lt.s32.totalorder %s871_s29, %s871_s29 }
  0x1e   :  { %p878_p0 = por %p877_p13, %p876_p12 }
  0x20   :  { %p879_p1 = pnand %p878_p0, %p872_p11 }
  0x22   :  { %882 = shalt.err (!%p879_p1)
}
  0x23   :  { %s983_s1 = smov 128   ;;  %s984_s28 = smov 8  }
  0x24   :  { %66 = dma.hbm_to_vmem [thread:$0]  %s1163_s4, 4096, %s1038_s30, [#allocation10], %s983_s1, %s983_s1, %s984_s28  }
  0x25   :  { %s985_s11 = smov [#allocation3]   ;;  %s986_s13 = smov [#allocation8]  }
  0x26   :  { %s22_s12 = sshll.u32 %s985_s11, 4  ;;  %s46_s14 = sshll.u32 %s986_s13, 4  ;;  %s23_s12 = int_to_ptr.vmem [resolvable:$true] %s22_s12  ;;  %s1075_s14 = int_to_ptr.vmem [resolvable:$true] %s46_s14 }
  0x27   :  { %s883_s19 = scalar_lea.hbm %s1159_s0, 128 }
  0x28   :  { %p884_p2 = scmp.ne.s32.totalorder %s1159_s0, %s883_s19  ;;  %p887_p3 = scmp.lt.u32.totalorder %s883_s19, %s1159_s0 }
  0x2a   :  { %p889_p4 = pnand %p887_p3, %p884_p2 }
  0x2c   :  { %892 = shalt.err (!%p889_p4)
}
  0x2d   :  { %s893_s4 = scalar_lea.vmem %s23_s12, 128  ;;  %p898_p6 = scmp.lt.s32.totalorder %s23_s12, %s23_s12 }
  0x2e   :  { %p894_p5 = scmp.ne.s32.totalorder %s23_s12, %s893_s4  ;;  %p899_p7 = scmp.lt.s32.totalorder %s893_s4, %s893_s4 }
  0x30   :  { %p900_p8 = por %p899_p7, %p898_p6 }
  0x32   :  { %p901_p9 = pnand %p900_p8, %p894_p5 }
  0x34   :  { %904 = shalt.err (!%p901_p9)
}
  0x35   :  { %28 = dma.hbm_to_vmem [thread:$0]  %s1159_s0, 128, %s23_s12, [#allocation4], %s981_s17, %s981_s17, %s982_s18  }
  0x36   :  { %s905_s27 = scalar_lea.hbm %s1161_s2, 4096 }
  0x37   :  { %p906_p10 = scmp.ne.s32.totalorder %s1161_s2, %s905_s27  ;;  %p909_p11 = scmp.lt.u32.totalorder %s905_s27, %s1161_s2 }
  0x39   :  { %p911_p12 = pnand %p909_p11, %p906_p10 }
  0x3b   :  { %914 = shalt.err (!%p911_p12)
}
  0x3c   :  { %s915_s13 = scalar_lea.vmem %s1075_s14, 4096  ;;  %p920_p0 = scmp.lt.s32.totalorder %s1075_s14, %s1075_s14 }
  0x3d   :  { %p916_p13 = scmp.ne.s32.totalorder %s1075_s14, %s915_s13  ;;  %p921_p1 = scmp.lt.s32.totalorder %s915_s13, %s915_s13 }
  0x3f   :  { %p922_p2 = por %p921_p1, %p920_p0 }
  0x41   :  { %p923_p3 = pnand %p922_p2, %p916_p13 }
  0x43   :  { %926 = shalt.err (!%p923_p3)
}
  0x44   :  { %s987_s0 = smov 256   ;;  %s988_s17 = smov 16  }
  0x45   :  { %52 = dma.hbm_to_vmem [thread:$0]  %s1161_s2, 4096, %s1075_s14, [#allocation7], %s987_s0, %s987_s0, %s988_s17  }
  0x46   :  { %s989_s15 = smov [#allocation11]   ;;  %s927_s21 = scalar_lea.hbm %s1165_s6, 2048 }
  0x47   :  { %s74_s16 = sshll.u32 %s989_s15, 4  ;;  %p928_p4 = scmp.ne.s32.totalorder %s1165_s6, %s927_s21  ;;  %s75_s16 = int_to_ptr.vmem [resolvable:$true] %s74_s16 }
  0x48   :  { %p931_p5 = scmp.lt.u32.totalorder %s927_s21, %s1165_s6 }
  0x4a   :  { %p933_p6 = pnand %p931_p5, %p928_p4 }
  0x4c   :  { %936 = shalt.err (!%p933_p6)
}
  0x4d   :  { %s937_s24 = scalar_lea.vmem %s75_s16, 2048  ;;  %p942_p8 = scmp.lt.s32.totalorder %s75_s16, %s75_s16 }
  0x4e   :  { %p938_p7 = scmp.ne.s32.totalorder %s75_s16, %s937_s24  ;;  %p943_p9 = scmp.lt.s32.totalorder %s937_s24, %s937_s24 }
  0x50   :  { %p944_p10 = por %p943_p9, %p942_p8 }
  0x52   :  { %p945_p11 = pnand %p944_p10, %p938_p7 }
  0x54   :  { %948 = shalt.err (!%p945_p11)
}
  0x55   :  { %80 = dma.hbm_to_vmem [thread:$0]  %s1165_s6, 2048, %s75_s16, [#allocation10], %s983_s1, %s983_s1, %s984_s28  }
  0x56   :  { %971 = dma.done.wait [#allocation4], 128  }
  0x57   :  { %972 = vsyncadd [#allocation4], 4294967168 }
  0x58   :  { %973 = dma.done.wait [#allocation7], 5120  }
  0x59   :  { %974 = vsyncadd [#allocation7], 4294962176 }
  0x5a   :  { %975 = dma.done.wait [#allocation10], 6144  }
  0x5b   :  { %976 = vsyncadd [#allocation10], 4294961152  ;;  %v990_v0 = vmov 0.0   ;;  %vm991_vm0 = vmmov 0   ;;  %v830_v1 = vld [vmem:[#allocation6] sm:$0xff]   ;;  %v831_v2 = vld [vmem:[#allocation6 + $0x8] sm:$0xff]  }
  0x5c   :  { %665 = vmatprep.subr.bf16.mxu0 %v990_v0  ;;  %681 = vmatprep.mubr.msk.bf16.mxu0 %vm991_vm0, %v990_v0  ;;  %v832_v3 = vld [vmem:[#allocation6 + $0x10] sm:$0xff]   ;;  %v833_v4 = vld [vmem:[#allocation6 + $0x18] sm:$0xff]   ;;  %v230_v5 = vld [vmem:[#allocation8 + $0x8] sm:$0xff]  ;;  %s992_s9 = smov [#allocation12]  }
  0x5d   :  { %337 = vmatprep.mubr.f32.mxu1 %v990_v0  ;;  %666 = vmatpush3.bf16.msra.mxu0 %v830_v1  ;;  %v232_v6 = vld [vmem:[#allocation8 + $0x18] sm:$0xff]  ;;  %v229_v7 = vld [vmem:[#allocation8] sm:$0xff]  ;;  %v231_v9 = vld [vmem:[#allocation8 + $0x10] sm:$0xff]  ;;  %s575_s10 = sshll.u32 %s992_s9, 4  ;;  %s576_s10 = int_to_ptr.vmem [resolvable:$true] %s575_s10 }
  0x5e   :  { %667 = vmatprep.subr.bf16.mxu0 %v990_v0  ;;  %v720_v8 = vpack.c.bf16 %v232_v6, %v230_v5  ;;  %v234_v10 = vld [vmem:[#allocation8 + $0x28] sm:$0xff]  ;;  %v236_v11 = vld [vmem:[#allocation8 + $0x38] sm:$0xff]  ;;  %v722_v12 = vpack.c.bf16 %v231_v9, %v229_v7  ;;  %v233_v14 = vld [vmem:[#allocation8 + $0x20] sm:$0xff]  ;;  %p954_p13 = scmp.lt.s32.totalorder %s576_s10, %s576_s10 }
  0x5f   :  { %v724_v13 = vpack.c.bf16 %v236_v11, %v234_v10  ;;  %v235_v15 = vld [vmem:[#allocation8 + $0x30] sm:$0xff]  ;;  %v238_v16 = vld [vmem:[#allocation8 + $0x48] sm:$0xff]  ;;  %v240_v17 = vld [vmem:[#allocation8 + $0x58] sm:$0xff] }
  0x60   :  { %721 = vmatprep.subr.bf16.mxu1 %v720_v8  ;;  %v726_v18 = vpack.c.bf16 %v235_v15, %v233_v14  ;;  %v834_v19 = vld [vmem:[#allocation6 + $0x20] sm:$0xff]   ;;  %v728_v20 = vpack.c.bf16 %v240_v17, %v238_v16  ;;  %v239_v22 = vld [vmem:[#allocation8 + $0x50] sm:$0xff]  ;;  %v242_v23 = vld [vmem:[#allocation8 + $0x68] sm:$0xff] }
  0x61   :  { %668 = vmatpush3.bf16.msra.mxu0 %v831_v2  ;;  %723 = vmatpush1.bf16.msra.mxu1 %v722_v12  ;;  %v237_v21 = vld [vmem:[#allocation8 + $0x40] sm:$0xff]  ;;  %v244_v24 = vld [vmem:[#allocation8 + $0x78] sm:$0xff]  ;;  %v835_v26 = vld [vmem:[#allocation6 + $0x28] sm:$0xff]  }
  0x62   :  { %669 = vmatprep.subr.bf16.mxu0 %v990_v0  ;;  %725 = vmatprep.subr.bf16.mxu1 %v724_v13  ;;  %v730_v25 = vpack.c.bf16 %v239_v22, %v237_v21  ;;  %v732_v27 = vpack.c.bf16 %v244_v24, %v242_v23  ;;  %v241_v28 = vld [vmem:[#allocation8 + $0x60] sm:$0xff]  ;;  %v243_v29 = vld [vmem:[#allocation8 + $0x70] sm:$0xff]  ;;  %v246_v30 = vld [vmem:[#allocation8 + $0x88] sm:$0xff] }
  0x63   :  { %v248_v31 = vld [vmem:[#allocation8 + $0x98] sm:$0xff]  ;;  %v734_v32 = vpack.c.bf16 %v243_v29, %v241_v28  ;;  %v836_v33 = vld [vmem:[#allocation6 + $0x30] sm:$0xff]   ;;  %v245_v35 = vld [vmem:[#allocation8 + $0x80] sm:$0xff] }
  0x64   :  { %v736_v34 = vpack.c.bf16 %v248_v31, %v246_v30  ;;  %v247_v36 = vld [vmem:[#allocation8 + $0x90] sm:$0xff]  ;;  %v250_v37 = vld [vmem:[#allocation8 + $0xa8] sm:$0xff]  ;;  %v252_v38 = vld [vmem:[#allocation8 + $0xb8] sm:$0xff] }
  0x65   :  { %670 = vmatpush3.bf16.msra.mxu0 %v832_v3  ;;  %727 = vmatpush1.bf16.msra.mxu1 %v726_v18  ;;  %v738_v39 = vpack.c.bf16 %v247_v36, %v245_v35  ;;  %v837_v40 = vld [vmem:[#allocation6 + $0x38] sm:$0xff]   ;;  %v740_v41 = vpack.c.bf16 %v252_v38, %v250_v37  ;;  %v249_v42 = vld [vmem:[#allocation8 + $0xa0] sm:$0xff]  ;;  %v251_v43 = vld [vmem:[#allocation8 + $0xb0] sm:$0xff] }
  0x66   :  { %671 = vmatprep.subr.bf16.mxu0 %v990_v0  ;;  %729 = vmatprep.subr.bf16.mxu1 %v728_v20  ;;  %v254_v44 = vld [vmem:[#allocation8 + $0xc8] sm:$0xff]  ;;  %v256_v45 = vld [vmem:[#allocation8 + $0xd8] sm:$0xff]  ;;  %v742_v47 = vpack.c.bf16 %v251_v43, %v249_v42  ;;  %v253_v49 = vld [vmem:[#allocation8 + $0xc0] sm:$0xff] }
  0x67   :  { %v838_v46 = vld [vmem:[#allocation3] sm:$0xff]   ;;  %v744_v48 = vpack.c.bf16 %v256_v45, %v254_v44  ;;  %v255_v50 = vld [vmem:[#allocation8 + $0xd0] sm:$0xff]  ;;  %v258_v51 = vld [vmem:[#allocation8 + $0xe8] sm:$0xff] }
  0x68   :  { %v260_v52 = vld [vmem:[#allocation8 + $0xf8] sm:$0xff]  ;;  %v746_v53 = vpack.c.bf16 %v255_v50, %v253_v49  ;;  %v257_v55 = vld [vmem:[#allocation8 + $0xe0] sm:$0xff]  ;;  %v259_v56 = vld [vmem:[#allocation8 + $0xf0] sm:$0xff] }
  0x69   :  { %672 = vmatpush3.bf16.msra.mxu0 %v833_v4  ;;  %731 = vmatpush1.bf16.msra.mxu1 %v730_v25  ;;  %v748_v54 = vpack.c.bf16 %v260_v52, %v258_v51  ;;  %v750_v57 = vpack.c.bf16 %v259_v56, %v257_v55  ;;  %v370_v58 = vld [vmem:[#allocation9 + $0x80] sm:$0xff]  ;;  %v371_v59 = vld [vmem:[#allocation9 + $0x88] sm:$0xff]  ;;  %v372_v63 = vld [vmem:[#allocation9 + $0x90] sm:$0xff] }
  0x6a   :  { %673 = vmatprep.subr.bf16.mxu0 %v990_v0  ;;  %733 = vmatprep.subr.bf16.mxu1 %v732_v27  ;;  %v354_v60 = vld [vmem:[#allocation9] sm:$0xff]  ;;  %v752_v61 = vpack.c.bf16 %v371_v59, %v370_v58  ;;  %v355_v62 = vld [vmem:[#allocation9 + $0x8] sm:$0xff]  ;;  %v373_v1 = vld [vmem:[#allocation9 + $0x98] sm:$0xff] }
  0x6b   :  { %v754_v2 = vpack.c.bf16 %v355_v62, %v354_v60  ;;  %v756_v3 = vpack.c.bf16 %v373_v1, %v372_v63  ;;  %v356_v4 = vld [vmem:[#allocation9 + $0x10] sm:$0xff]  ;;  %v357_v5 = vld [vmem:[#allocation9 + $0x18] sm:$0xff]  ;;  %v374_v6 = vld [vmem:[#allocation9 + $0xa0] sm:$0xff] }
  0x6c   :  { %v375_v7 = vld [vmem:[#allocation9 + $0xa8] sm:$0xff]  ;;  %v758_v8 = vpack.c.bf16 %v357_v5, %v356_v4  ;;  %v358_v10 = vld [vmem:[#allocation9 + $0x20] sm:$0xff]  ;;  %v376_v12 = vld [vmem:[#allocation9 + $0xb0] sm:$0xff] }
  0x6d   :  { %674 = vmatpush3.bf16.msra.mxu0 %v834_v19  ;;  %735 = vmatpush1.bf16.msra.mxu1 %v734_v32  ;;  %v760_v9 = vpack.c.bf16 %v375_v7, %v374_v6  ;;  %v359_v11 = vld [vmem:[#allocation9 + $0x28] sm:$0xff]  ;;  %v377_v13 = vld [vmem:[#allocation9 + $0xb8] sm:$0xff]  ;;  %v360_v16 = vld [vmem:[#allocation9 + $0x30] sm:$0xff] }
  0x6e   :  { %675 = vmatprep.subr.bf16.mxu0 %v990_v0  ;;  %737 = vmatprep.subr.bf16.mxu1 %v736_v34  ;;  %v762_v14 = vpack.c.bf16 %v359_v11, %v358_v10  ;;  %v764_v15 = vpack.c.bf16 %v377_v13, %v376_v12  ;;  %v361_v17 = vld [vmem:[#allocation9 + $0x38] sm:$0xff]  ;;  %v378_v18 = vld [vmem:[#allocation9 + $0xc0] sm:$0xff]  ;;  %v379_v19 = vld [vmem:[#allocation9 + $0xc8] sm:$0xff] }
  0x6f   :  { %v766_v20 = vpack.c.bf16 %v361_v17, %v360_v16  ;;  %v768_v21 = vpack.c.bf16 %v379_v19, %v378_v18  ;;  %v362_v22 = vld [vmem:[#allocation9 + $0x40] sm:$0xff]  ;;  %v363_v23 = vld [vmem:[#allocation9 + $0x48] sm:$0xff]  ;;  %v380_v24 = vld [vmem:[#allocation9 + $0xd0] sm:$0xff] }
  0x70   :  { %v381_v25 = vld [vmem:[#allocation9 + $0xd8] sm:$0xff]  ;;  %v364_v28 = vld [vmem:[#allocation9 + $0x50] sm:$0xff]  ;;  %v382_v30 = vld [vmem:[#allocation9 + $0xe0] sm:$0xff] }
  0x71   :  { %676 = vmatpush3.bf16.msra.mxu0 %v835_v26  ;;  %739 = vmatpush1.bf16.msra.mxu1 %v738_v39  ;;  %v770_v26 = vpack.c.bf16 %v363_v23, %v362_v22  ;;  %v772_v27 = vpack.c.bf16 %v381_v25, %v380_v24  ;;  %v365_v29 = vld [vmem:[#allocation9 + $0x58] sm:$0xff]  ;;  %v383_v31 = vld [vmem:[#allocation9 + $0xe8] sm:$0xff]  ;;  %v366_v38 = vld [vmem:[#allocation9 + $0x60] sm:$0xff] }
  0x72   :  { %677 = vmatprep.subr.bf16.mxu0 %v990_v0  ;;  %741 = vmatprep.subr.bf16.mxu1 %v740_v41  ;;  %v774_v32 = vpack.c.bf16 %v365_v29, %v364_v28  ;;  %v367_v39 = vld [vmem:[#allocation9 + $0x68] sm:$0xff]  ;;  %v384_v41 = vld [vmem:[#allocation9 + $0xf0] sm:$0xff]  ;;  %v385_v42 = vld [vmem:[#allocation9 + $0xf8] sm:$0xff] }
  0x73   :  { %v780_v43 = vpack.c.bf16 %v385_v42, %v384_v41  ;;  %v368_v44 = vld [vmem:[#allocation9 + $0x70] sm:$0xff]  ;;  %v369_v45 = vld [vmem:[#allocation9 + $0x78] sm:$0xff]  ;;  %v474_v52 = vld [vmem:[#allocation11 + $0x20] sm:$0xff] }
  0x74   :  { %v472_v49 = vld [vmem:[#allocation11 + $0x10] sm:$0xff]  ;;  %v473_v51 = vld [vmem:[#allocation11 + $0x18] sm:$0xff]  ;;  %v478_v58 = vld [vmem:[#allocation11 + $0x40] sm:$0xff] }
  0x75   :  { %678 = vmatpush3.bf16.msra.mxu0 %v836_v33  ;;  %743 = vmatpush1.bf16.msra.mxu1 %v742_v47  ;;  %v776_v33 = vpack.c.bf16 %v383_v31, %v382_v30  ;;  %v470_v47 = vld [vmem:[#allocation11] sm:$0xff]  ;;  %v476_v55 = vld [vmem:[#allocation11 + $0x30] sm:$0xff]  ;;  %v477_v56 = vld [vmem:[#allocation11 + $0x38] sm:$0xff] }
  0x76   :  { %679 = vmatprep.subr.bf16.mxu0 %v990_v0  ;;  %745 = vmatprep.subr.bf16.mxu1 %v744_v48  ;;  %v471_v48 = vld [vmem:[#allocation11 + $0x8] sm:$0xff]  ;;  %v261_v1 = vld [vmem:[%s1162_s3] sm:$0x3]  ;;  %v480_v17 = vld [vmem:[#allocation11 + $0x50] sm:$0xff] }
  0x77   :  { %v784_v50 = vpack.c.bf16 %v471_v48, %v470_v47  ;;  %v479_v59 = vld [vmem:[#allocation11 + $0x48] sm:$0xff]  ;;  %v481_v18 = vld [vmem:[#allocation11 + $0x58] sm:$0xff]  ;;  %v484_v23 = vld [vmem:[#allocation11 + $0x70] sm:$0xff] }
  0x78   :  { %v800_v60 = vpack.c.bf16 %v479_v59, %v478_v58  ;;  %v804_v19 = vpack.c.bf16 %v481_v18, %v480_v17  ;;  %v485_v24 = vld [vmem:[#allocation11 + $0x78] sm:$0xff] }
  0x79   :  { %680 = vmatpush3.bf16.msra.mxu0 %v837_v40  ;;  %747 = vmatpush1.bf16.msra.mxu1 %v746_v53  ;;  %v778_v40 = vpack.c.bf16 %v367_v39, %v366_v38  ;;  %v475_v53 = vld [vmem:[#allocation11 + $0x28] sm:$0xff]  ;;  %v812_v25 = vpack.c.bf16 %v485_v24, %v484_v23 }
  0x7a   :  { %749 = vmatprep.subr.bf16.mxu1 %v748_v54  ;;  %753 = vmatprep.subr.bf16.mxu0 %v752_v61  ;;  %v792_v54 = vpack.c.bf16 %v475_v53, %v474_v52  ;;  %v263_v61 = vlaneseq }
  0x7c   :  { %682 = vmatmul.mubr.bf16.vlgmr.msra.gmra.mrb[0].mxu0 %v838_v46  ;;  %v782_v46 = vpack.c.bf16 %v369_v45, %v368_v44  ;;  %v264_v62 = vshrl.u32 %v263_v61, 7 }
  0x7d   :  { %751 = vmatpush1.bf16.msra.mxu1 %v750_v57  ;;  %755 = vmatpush3.bf16.msra.mxu0 %v754_v2  ;;  %v796_v57 = vpack.c.bf16 %v477_v56, %v476_v55 }
  0x7e   :  { %757 = vmatprep.subr.bf16.mxu0 %v756_v3  ;;  %785 = vmatprep.subr.bf16.mxu1 %v784_v50  ;;  %v265_v63 = vsub.s32 0, %v264_v62  ;;  %v269_v2 = vsub.s32 1, %v264_v62 }
  0x80   :  { %v266_v3 = vrot.slane %v261_v1, %v265_v63  ;;  %v270_v4 = vrot.slane %v261_v1, %v269_v2 }
  0x81   :  { %759 = vmatpush3.bf16.msra.mxu0 %v758_v8 }
  0x82   :  { %761 = vmatprep.subr.bf16.mxu0 %v760_v9 }
  0x85   :  { %763 = vmatpush3.bf16.msra.mxu0 %v762_v14 }
  0x86   :  { %765 = vmatprep.subr.bf16.mxu0 %v764_v15 }
  0x89   :  { %767 = vmatpush3.bf16.msra.mxu0 %v766_v20  ;;  %v482_v20 = vld [vmem:[#allocation11 + $0x60] sm:$0xff] }
  0x8a   :  { %769 = vmatprep.subr.bf16.mxu0 %v768_v21  ;;  %v483_v21 = vld [vmem:[#allocation11 + $0x68] sm:$0xff] }
  0x8b   :  { %v808_v22 = vpack.c.bf16 %v483_v21, %v482_v20 }
  0x8d   :  { %771 = vmatpush3.bf16.msra.mxu0 %v770_v26 }
  0x8e   :  { %773 = vmatprep.subr.bf16.mxu0 %v772_v27  ;;  %v598_v27 = vld [vmem:[%s1164_s5] ss:$0 sm:$0xff]  ;;  %s949_s5 = scalar_lea.vmem %s576_s10, 256 }
  0x8f   :  { %p950_p12 = scmp.ne.s32.totalorder %s576_s10, %s949_s5  ;;  %p955_p0 = scmp.lt.s32.totalorder %s949_s5, %s949_s5 }
  0x91   :  { %775 = vmatpush3.bf16.msra.mxu0 %v774_v32  ;;  %p956_p1 = por %p955_p0, %p954_p13 }
  0x92   :  { %777 = vmatprep.subr.bf16.mxu0 %v776_v33 }
  0x93   :  { %p957_p2 = pnand %p956_p1, %p950_p12 }
  0x95   :  { %779 = vmatpush3.bf16.msra.mxu0 %v778_v40 }
  0x96   :  { %781 = vmatprep.subr.bf16.mxu0 %v780_v43 }
  0x99   :  { %783 = vmatpush3.bf16.msra.mxu0 %v782_v46 }
 0x14f   :  { %v213_v34 = vpop.f32.mrb[0].mxu0 }
 0x150   :  { %v683_v35 = vpop.f32.mrb[1].mxu0  ;;  %338 = vmatmul.mubr.f32.vlgmr.msra.gmra.mrb[0].mxu1 %v213_v34 }
 0x151   :  { %v216_v36 = vpop.f32.mrb[2].mxu0  ;;  %343 = vmatprep.mubr.f32.mxu1 %v990_v0  ;;  %v788_v0 = vpack.c.bf16 %v473_v51, %v472_v49  ;;  %787 = vmatpush3.bf16.msra.mxu1 %v784_v50 }
 0x152   :  { %v684_v37 = vpop.f32.mrb[3].mxu0 }
 0x153   :  { %789 = vmatprep.subr.bf16.mxu1 %v788_v0  ;;  %v599_v37 = vld [vmem:[%s1166_s7] ss:$0 sm:$0xff] }
 0x154   :  { %344 = vmatmul.mubr.f32.gmra.mrb[2].mxu1 %v216_v36 }
 0x155   :  { %791 = vmatpush3.bf16.msra.mxu1 %v788_v0 }
 0x156   :  { %793 = vmatprep.subr.bf16.mxu1 %v792_v54 }
 0x159   :  { %795 = vmatpush3.bf16.msra.mxu1 %v792_v54 }
 0x15a   :  { %797 = vmatprep.subr.bf16.mxu1 %v796_v57 }
 0x15d   :  { %799 = vmatpush3.bf16.msra.mxu1 %v796_v57 }
 0x15e   :  { %801 = vmatprep.subr.bf16.mxu1 %v800_v60 }
 0x161   :  { %803 = vmatpush3.bf16.msra.mxu1 %v800_v60 }
 0x162   :  { %805 = vmatprep.subr.bf16.mxu1 %v804_v19 }
 0x165   :  { %807 = vmatpush3.bf16.msra.mxu1 %v804_v19 }
 0x166   :  { %809 = vmatprep.subr.bf16.mxu1 %v808_v22 }
 0x169   :  { %811 = vmatpush3.bf16.msra.mxu1 %v808_v22 }
 0x16a   :  { %813 = vmatprep.subr.bf16.mxu1 %v812_v25 }
 0x16d   :  { %815 = vmatpush3.bf16.msra.mxu1 %v812_v25 }
 0x223   :  { %v339_v5 = vpop.f32.mrb[0].mxu1 }
 0x224   :  { %v340_v6 = vadd.f32 %v339_v5, %v266_v3  ;;  %v341_v7 = vpop.f32.mrb[1].mxu1 }
 0x225   :  { %v342_v8 = vadd.f32 %v341_v7, %v270_v4 }
 0x226   :  { %v350_v11 = vmax.f32 %v340_v6, 0.0 }
 0x227   :  { %v351_v9 = vmax.f32 %v342_v8, 0.0  ;;  %v345_v10 = vpop.f32.mrb[2].mxu1 }
 0x228   :  { %v346_v12 = vadd.f32 %v345_v10, %v266_v3  ;;  %v347_v13 = vpop.f32.mrb[3].mxu1 }
 0x229   :  { %v348_v14 = vadd.f32 %v347_v13, %v270_v4  ;;  %457 = vmatprep.mubr.f32.mxu0 %v351_v9 }
 0x22a   :  { %458 = vmatmul.mubr.f32.vlgmr.msra.gmra.mrb[4].mxu0 %v350_v11  ;;  %v352_v16 = vmax.f32 %v346_v12, 0.0 }
 0x22b   :  { %v353_v15 = vmax.f32 %v348_v14, 0.0 }
 0x22d   :  { %462 = vmatprep.mubr.f32.mxu0 %v353_v15 }
 0x22e   :  { %463 = vmatmul.mubr.f32.gmra.mrb[6].mxu0 %v352_v16 }
 0x2fd   :  { %v641_v26 = vpop.f32.mrb[4].mxu0 }
 0x2fe   :  { %v642_v28 = vpop.f32.mrb[5].mxu0 }
 0x2ff   :  { %v643_v29 = vadd.f32 %v642_v28, %v641_v26 }
 0x301   :  { %v460_v30 = vadd.f32 %v643_v29, %v598_v27  ;;  %v644_v31 = vpop.f32.mrb[6].mxu0 }
 0x302   :  { %v645_v32 = vpop.f32.mrb[7].mxu0 }
 0x303   :  { %v468_v33 = vmax.f32 %v460_v30, 0.0  ;;  %v646_v34 = vadd.f32 %v645_v32, %v644_v31 }
 0x305   :  { %v465_v35 = vadd.f32 %v646_v34, %v598_v27  ;;  %717 = vmatprep.mubr.f32.mxu1 %v468_v33 }
 0x307   :  { %v469_v36 = vmax.f32 %v465_v35, 0.0 }
 0x309   :  { %718 = vmatmul.mubr.f32.vlgmr.msra.gmra.mrb[4].mxu1 %v469_v36 }
 0x3dc   :  { %v719_v38 = vpop.f32.mrb[4].mxu1 }
 0x3dd   :  { %v565_v39 = vadd.f32 %v719_v38, %v599_v37  ;;  %v559_v40 = vpop.f32.mrb[5].mxu1 }
 0x3de   :  { %v560_v41 = vadd.f32 %v599_v37, %v559_v40 }
 0x3df   :  { %569 = vst [vmem:[#allocation12 + $0x8] sm:$0xff] %v565_v39 }
 0x3e0   :  { %568 = vst [vmem:[#allocation12] sm:$0xff] %v560_v41 }
 0x3e1   :  { %960 = shalt.err (!%p957_p2)
}
 0x3e2   :  { %s961_s7 = scalar_lea.hbm %s1167_s8, 256 }
 0x3e3   :  { %p962_p3 = scmp.ne.s32.totalorder %s1167_s8, %s961_s7  ;;  %p965_p4 = scmp.lt.u32.totalorder %s961_s7, %s1167_s8 }
 0x3e5   :  { %p967_p5 = pnand %p965_p4, %p962_p3 }
 0x3e7   :  { %970 = shalt.err (!%p967_p5)
}
 0x3e8   :  { %581 = dma.vmem_to_hbm [thread:$0]  %s576_s10, 256, %s1167_s8, [#allocation5], %s983_s1, %s983_s1, %s984_s28  }
 0x3e9   :  { %977 = dma.done.wait [#allocation5], 256  }
 0x3ea   :  { %978 = vsyncadd [#allocation5], 4294967040 }
 0x3eb   :  { %585 = vsyncpa [#allocation4], 1 }
 0x3ec   :  { %586 = vsyncpa [#allocation7], 1 }
 0x3ed   :  { %587 = vsyncpa [#allocation10], 1 }
 0x3ee   :  { %588 = vsyncpa [#allocation5], 1 }

</bundles_post_ra>
